<compile_context>
chip_gen: v6e
topology: v6e:2x2x1
jax: 0.10.0
libtpu: 0.0.40
codegen_flags: <defaults>
</compile_context>

<pallas_src>
import functools

import jax
import jax.numpy as jnp
import numpy as np
from jax.experimental import pallas as pl
from jax.experimental.pallas import tpu as pltpu

BN_EPS = 1e-5
LANE = 128


def _round_up(x, m):
    return ((x + m - 1) // m) * m


@functools.lru_cache(maxsize=None)
def _vmem_limit_bytes():
    """Per-generation scoped-VMEM budget (v7x: 64 MiB physical, others 128)."""
    phys = None
    try:
        phys = int(pltpu.get_tpu_info().vmem_capacity_bytes)
    except Exception:
        phys = None
    if phys is None:
        try:
            kind = jax.devices()[0].device_kind.lower()
        except Exception:
            kind = ""
        phys = (64 if "v7" in kind else 128) * 1024 * 1024
    return int(max(32 * 1024 * 1024, min(phys * 3 // 4, 96 * 1024 * 1024)))


def _compiler_params():
    return pltpu.CompilerParams(
        dimension_semantics=("parallel", "parallel"),
        vmem_limit_bytes=_vmem_limit_bytes(),
    )


def _pick_tile_h(H, W, Cpad, requested=None):
    """Band height (must divide H).  Target scales with the VMEM budget."""
    if requested is not None:
        if not (1 <= requested <= H and H % requested == 0):
            raise ValueError(f"tile_h={requested} must divide H={H}")
        return requested
    target_bytes = min(8 << 20, max(1 << 19, _vmem_limit_bytes() // 24))
    target = max(1, target_bytes // (4 * W * Cpad))
    # Largest divisor of H not exceeding 2*target (avoids the tile_h=1 cliff
    # for most shapes).  TODO(synk): masked tail band for prime / awkward H.
    best = 1
    for t in range(1, H + 1):
        if H % t == 0 and t <= 2 * target:
            best = t
    return best


# ---------------------------------------------------------------------------
# Conv kernel: (optional fused previous-stage BN+ReLU) -> 3x3 conv as three
# accumulating MXU matmuls over ky -> bf16 pre-BN band + robust BN partials.
# ---------------------------------------------------------------------------
def _make_conv_kernel(apply_input_act, write_width_halo):
    def kernel(*refs):
        if apply_input_act:
            xt_ref, xm_ref, xb_ref, w_ref, sc_ref, sh_ref, y_ref, s_ref = refs
        else:
            xt_ref, xm_ref, xb_ref, w_ref, y_ref, s_ref = refs

        tile_h, wp, cin = xm_ref.shape          # input band carries width halo
        wimg = wp - 2
        cout = s_ref.shape[-1]

        # Assemble the (tile_h+2)-row band; halo rows were clamped (replicate)
        # by the index_maps, so this is exact edge padding.
        band = jnp.concatenate([xt_ref[...], xm_ref[...], xb_ref[...]], axis=0)

        if apply_input_act:
            # Previous stage's folded BatchNorm + ReLU, fused into this conv's
            # input load (f32 math, bf16 back for the MXU).
            a = band.astype(jnp.float32) * sc_ref[...] + sh_ref[...]
            band = jnp.maximum(a, 0.0).astype(jnp.bfloat16)

        # Lane-packed kx slab (3*Cin lanes) -- NOT the 9x im2col patch.
        slab = jnp.concatenate(
            [band[:, 0:wimg], band[:, 1:wimg + 1], band[:, 2:wimg + 2]],
            axis=-1)                                     # (tile_h+2, W, 3*Cin)

        acc = None
        for ky in range(3):      # three accumulating MXU matmuls, K = 3*Cin
            lhs = slab[ky:ky + tile_h].reshape(tile_h * wimg, 3 * cin)
            part = jnp.dot(lhs, w_ref[ky], preferred_element_type=jnp.float32)
            acc = part if acc is None else acc + part

        # Robust per-band BN partials: column sum + CENTERED sum of squares
        # (combined Chan-style in the wrapper -> no E[x^2]-E[x]^2 cancellation).
        # TODO(synk): if a v5e bundle shows VALU saturation, move these column
        # reductions onto the MXU with a ones-row matmul.
        s = jnp.sum(acc, axis=0, keepdims=True)
        mu = s * (1.0 / (tile_h * wimg))
        d = acc - mu
        s2c = jnp.sum(d * d, axis=0, keepdims=True)
        s_ref[...] = jnp.concatenate([s, s2c], axis=0)

        y = acc.reshape(tile_h, wimg, cout).astype(y_ref.dtype)
        if write_width_halo:
            # Replicate the edge columns so the NEXT conv stage can consume
            # this intermediate straight from HBM (no wrapper pad/gather).
            y = jnp.concatenate([y[:, :1], y, y[:, wimg - 1:]], axis=1)
        y_ref[...] = y

    return kernel


def conv_stats_stage(x, w3, sc_in, sh_in, *, apply_input_act,
                     write_width_halo, tile_h):
    """One 3x3 replicate-pad conv over a width-haloed NHWC bf16 input.

    x  : (N, H, W+2, Cin) bf16, width halo present, channels lane-padded
    w3 : (3, 3*Cin, Cout) bf16 per-ky weight slabs
    sc_in / sh_in : (Cin,) f32 folded BN of the previous stage (stage 2 only)
    Returns (y, stats): y = (N, H, Wout, Cout) bf16 pre-BN conv output
    (Wout = W+2 if write_width_halo else W); stats = (N, n_bands, 2, Cout) f32.
    """
    N, H, Wp, Cin = x.shape
    W = Wp - 2
    _, K3, Cout = w3.shape
    assert K3 == 3 * Cin and H % tile_h == 0
    n_bands = H // tile_h
    Wout = W + 2 if write_width_halo else W

    # Row halo = two extra 1-row views of the SAME HBM array; the index_maps
    # clamp at the image edges, which implements replicate padding exactly.
    top_map = lambda n, b: (n, jnp.maximum(b * tile_h - 1, 0), 0, 0)
    mid_map = lambda n, b: (n, b, 0, 0)
    bot_map = lambda n, b: (n, jnp.minimum((b + 1) * tile_h, H - 1), 0, 0)

    in_specs = [
        pl.BlockSpec((None, 1, Wp, Cin), top_map),
        pl.BlockSpec((None, tile_h, Wp, Cin), mid_map),
        pl.BlockSpec((None, 1, Wp, Cin), bot_map),
        pl.BlockSpec((3, K3, Cout), lambda n, b: (0, 0, 0)),
    ]
    args = [x, x, x, w3]
    if apply_input_act:
        in_specs.append(pl.BlockSpec((1, 1, Cin), lambda n, b: (0, 0, 0)))
        in_specs.append(pl.BlockSpec((1, 1, Cin), lambda n, b: (0, 0, 0)))
        args.append(sc_in.reshape(1, 1, Cin))
        args.append(sh_in.reshape(1, 1, Cin))

    y, stats = pl.pallas_call(
        _make_conv_kernel(apply_input_act, write_width_halo),
        grid=(N, n_bands),
        in_specs=in_specs,
        out_specs=[
            pl.BlockSpec((None, tile_h, Wout, Cout), lambda n, b: (n, b, 0, 0)),
            pl.BlockSpec((None, None, 2, Cout), lambda n, b: (n, b, 0, 0)),
        ],
        out_shape=[
            jax.ShapeDtypeStruct((N, H, Wout, Cout), jnp.bfloat16),
            jax.ShapeDtypeStruct((N, n_bands, 2, Cout), jnp.float32),
        ],
        compiler_params=_compiler_params(),
    )(*args)
    return y, stats


def _fold_bn(stats, gamma_p, beta_p, H, W, tile_h):
    """Exact training-mode BN (biased var) from per-band partials (Chan)."""
    cnt_b = float(tile_h * W)
    total = float(stats.shape[0] * H * W)
    s = stats[:, :, 0, :]                               # (N, n_bands, C)
    s2c = stats[:, :, 1, :]
    mean = jnp.sum(s, axis=(0, 1)) / total
    mean_b = s / cnt_b
    m2 = jnp.sum(s2c, axis=(0, 1)) + cnt_b * jnp.sum((mean_b - mean) ** 2,
                                                     axis=(0, 1))
    var = jnp.maximum(m2 / total, 0.0)
    scale = gamma_p * jax.lax.rsqrt(var + BN_EPS)
    shift = beta_p - mean * scale
    return scale, shift


# ---------------------------------------------------------------------------
# Final BN + ReLU (only the last stage keeps a standalone elementwise pass).
# ---------------------------------------------------------------------------
def _bn_relu_kernel(y_ref, sc_ref, sh_ref, o_ref):
    y = y_ref[...].astype(jnp.float32)
    o_ref[...] = jnp.maximum(y * sc_ref[...] + sh_ref[...], 0.0)


def bn_relu_stage(y, scale, shift, tile_h):
    N, H, W, C = y.shape
    n_bands = H // tile_h
    return pl.pallas_call(
        _bn_relu_kernel,
        grid=(N, n_bands),
        in_specs=[
            pl.BlockSpec((None, tile_h, W, C), lambda n, b: (n, b, 0, 0)),
            pl.BlockSpec((1, 1, C), lambda n, b: (0, 0, 0)),
            pl.BlockSpec((1, 1, C), lambda n, b: (0, 0, 0)),
        ],
        out_specs=pl.BlockSpec((None, tile_h, W, C), lambda n, b: (n, b, 0, 0)),
        out_shape=jax.ShapeDtypeStruct((N, H, W, C), jnp.float32),
        compiler_params=_compiler_params(),
    )(y, scale.reshape(1, 1, C), shift.reshape(1, 1, C))


# ---------------------------------------------------------------------------
# Parameters (nn.Module-style) and their kernel-side packing.
# ---------------------------------------------------------------------------
def init_double_conv_params(key, in_channels, out_channels):
    """Deterministic synthetic parameters (shapes match the nn.Module)."""
    k = jax.random.split(key, 6)

    def conv_init(kw, kb, cin, cout):
        fan_in = cin * 9
        bound = 1.0 / np.sqrt(fan_in)
        w = jax.random.uniform(kw, (3, 3, cin, cout), jnp.float32, -bound, bound)
        b = jax.random.uniform(kb, (cout,), jnp.float32, -bound, bound)
        return w, b

    w1, b1 = conv_init(k[0], k[1], in_channels, out_channels)
    w2, b2 = conv_init(k[2], k[3], out_channels, out_channels)
    g1 = 1.0 + 0.1 * jax.random.normal(k[4], (out_channels,), jnp.float32)
    bt1 = jnp.zeros((out_channels,), jnp.float32)
    g2 = 1.0 + 0.1 * jax.random.normal(k[5], (out_channels,), jnp.float32)
    bt2 = jnp.zeros((out_channels,), jnp.float32)
    return dict(w1=w1, b1=b1, g1=g1, bt1=bt1, w2=w2, b2=b2, g2=g2, bt2=bt2)


def prepare_kernel_params(p, in_channels, out_channels):
    """Pack/pad the nn.Module-style params for the Pallas kernels.

    Conv biases b1/b2 are intentionally dropped: a per-channel constant before
    training-mode BatchNorm is exactly cancelled by the mean subtraction.
    """
    cin_pad = _round_up(in_channels, LANE)   # lane/MXU-friendly stage-1 K depth
    cpad = _round_up(out_channels, LANE)

    def prep_w(w, cin, cin_padded):
        w = jnp.pad(w, ((0, 0), (0, 0),
                        (0, cin_padded - cin),
                        (0, cpad - out_channels)))
        # (ky, kx, cin, cout) -> (ky, kx*cin_padded + cin, cout): matches the
        # kernel's lane-packed kx slab ordering.
        return w.reshape(3, 3 * cin_padded, cpad).astype(jnp.bfloat16)

    def prep_c(v):
        return jnp.pad(v, (0, cpad - out_channels)).astype(jnp.float32)

    return dict(
        w1=prep_w(p["w1"], in_channels, cin_pad),
        w2=prep_w(p["w2"], out_channels, cpad),
        g1=prep_c(p["g1"]), bt1=prep_c(p["bt1"]),
        g2=prep_c(p["g2"]), bt2=prep_c(p["bt2"]),
    )


def double_conv(x_nchw, kp, out_channels, tile_h=None):
    """DoubleConv.forward. Input/output: NCHW (PyTorch convention)."""
    x = jnp.transpose(x_nchw, (0, 2, 3, 1))              # NCHW -> NHWC
    N, H, W, Cin = x.shape
    cin_pad = kp["w1"].shape[1] // 3
    cpad = kp["w1"].shape[2]
    th = _pick_tile_h(H, W, cpad, tile_h)

    # Cheap wrapper prep on the (small) raw input only: width replicate halo,
    # channel zero-pad to a lane multiple, bf16 cast.
    x = jnp.pad(x, ((0, 0), (0, 0), (1, 1), (0, 0)), mode="edge")
    x = jnp.pad(x, ((0, 0), (0, 0), (0, 0), (0, cin_pad - Cin)))
    x = x.astype(jnp.bfloat16)

    # Stage 1: conv + BN partials; writes a width-haloed bf16 pre-BN band so
    # stage 2 reads it directly (no intermediate pad/gather in HBM).
    y1, st1 = conv_stats_stage(x, kp["w1"], None, None,
                               apply_input_act=False, write_width_halo=True,
                               tile_h=th)
    sc1, sh1 = _fold_bn(st1, kp["g1"], kp["bt1"], H, W, th)

    # Stage 2: stage-1's BN+ReLU fused into this conv's input load.
    y2, st2 = conv_stats_stage(y1, kp["w2"], sc1, sh1,
                               apply_input_act=True, write_width_halo=False,
                               tile_h=th)
    sc2, sh2 = _fold_bn(st2, kp["g2"], kp["bt2"], H, W, th)

    out = bn_relu_stage(y2, sc2, sh2, th)                # (N,H,W,cpad) f32
    out = out[..., :out_channels]                        # drop lane padding
    return jnp.transpose(out, (0, 3, 1, 2))              # NHWC -> NCHW


# --- pure-JAX reference for verification (exact PyTorch semantics, f32) -----
def _ref_stage(x_nhwc, w, b, g, bt):
    xp = jnp.pad(x_nhwc, ((0, 0), (1, 1), (1, 1), (0, 0)), mode="edge")
    y = jax.lax.conv_general_dilated(
        xp, w, window_strides=(1, 1), padding="VALID",
        dimension_numbers=("NHWC", "HWIO", "NHWC")) + b
    mean = y.mean(axis=(0, 1, 2), keepdims=True)
    var = ((y - mean) ** 2).mean(axis=(0, 1, 2), keepdims=True)
    y = (y - mean) * jax.lax.rsqrt(var + BN_EPS) * g + bt
    return jnp.maximum(y, 0.0)


def double_conv_ref(x_nchw, p):
    x = jnp.transpose(x_nchw, (0, 2, 3, 1))
    y = _ref_stage(x, p["w1"], p["b1"], p["g1"], p["bt1"])
    y = _ref_stage(y, p["w2"], p["b2"], p["g2"], p["bt2"])
    return jnp.transpose(y, (0, 3, 1, 2))


if __name__ == "__main__":
    key = jax.random.PRNGKey(0)
    kx, kp = jax.random.split(key)

    N, C_in, C_out, H, W = 2, 4, 8, 16, 16
    x = jax.random.normal(kx, (N, C_in, H, W), jnp.float32)   # NCHW like PyTorch
    params = init_double_conv_params(kp, C_in, C_out)
    kparams = prepare_kernel_params(params, C_in, C_out)

    fwd = jax.jit(double_conv, static_argnames=("out_channels", "tile_h"))
    ref = jax.block_until_ready(double_conv_ref(x, params))

    # bf16 MXU operands + bf16 intermediates give ~1e-2-scale drift vs the
    # all-f32 reference after two BatchNorm-normalized stages.
    for th in (4, None):   # multi-band (interior + clamped halo) and single band
        out = jax.block_until_ready(fwd(x, kparams, out_channels=C_out, tile_h=th))
        assert out.shape == (N, C_out, H, W), out.shape
        np.testing.assert_allclose(np.asarray(out), np.asarray(ref),
                                   rtol=5e-2, atol=5e-2)
    print("KERNEL_OK")
</pallas_src>

<mosaic_0001>
module attributes {stable_mosaic.version = 11 : i64} {
  func.func @kernel(%arg0: i32, %arg1: i32, %arg2: memref<1x1x18x128xbf16, #tpu.memory_space<vmem>>, %arg3: memref<1x4x18x128xbf16, #tpu.memory_space<vmem>>, %arg4: memref<1x1x18x128xbf16, #tpu.memory_space<vmem>>, %arg5: memref<3x384x128xbf16, #tpu.memory_space<vmem>>, %arg6: memref<1x4x18x128xbf16, #tpu.memory_space<vmem>>, %arg7: memref<1x1x2x128xf32, #tpu.memory_space<vmem>>) attributes {dimension_semantics = [#tpu.dimension_semantics<parallel>, #tpu.dimension_semantics<parallel>], iteration_bounds = array<i64: 2, 4>, scalar_prefetch = 0 : i64, scratch_operands = 0 : i64, tpu.core_type = #tpu.core_type<tc>, window_params = [{transform_indices = @transform_0, window_bounds = array<i64: 1, 1, 18, 128>}, {transform_indices = @transform_1, window_bounds = array<i64: 1, 4, 18, 128>}, {transform_indices = @transform_2, window_bounds = array<i64: 1, 1, 18, 128>}, {pipeline_mode = #tpu.pipeline_mode<synchronous>, transform_indices = @transform_3, window_bounds = array<i64: 3, 384, 128>}, {transform_indices = @transform_4, window_bounds = array<i64: 1, 4, 18, 128>}, {transform_indices = @transform_5, window_bounds = array<i64: 1, 1, 2, 128>}]} {
    %c0 = arith.constant 0 : index
    %c0_0 = arith.constant 0 : index
    %c0_1 = arith.constant 0 : index
    %c0_2 = arith.constant 0 : index
    %0 = vector.load %arg2[%c0, %c0_0, %c0_1, %c0_2] : memref<1x1x18x128xbf16, #tpu.memory_space<vmem>>, vector<1x1x18x128xbf16>
    %1 = vector.shape_cast %0 : vector<1x1x18x128xbf16> to vector<1x18x128xbf16>
    %c0_3 = arith.constant 0 : index
    %c0_4 = arith.constant 0 : index
    %c0_5 = arith.constant 0 : index
    %c0_6 = arith.constant 0 : index
    %2 = vector.load %arg3[%c0_3, %c0_4, %c0_5, %c0_6] : memref<1x4x18x128xbf16, #tpu.memory_space<vmem>>, vector<1x4x18x128xbf16>
    %3 = vector.shape_cast %2 : vector<1x4x18x128xbf16> to vector<4x18x128xbf16>
    %c0_7 = arith.constant 0 : index
    %c0_8 = arith.constant 0 : index
    %c0_9 = arith.constant 0 : index
    %c0_10 = arith.constant 0 : index
    %4 = vector.load %arg4[%c0_7, %c0_8, %c0_9, %c0_10] : memref<1x1x18x128xbf16, #tpu.memory_space<vmem>>, vector<1x1x18x128xbf16>
    %5 = vector.shape_cast %4 : vector<1x1x18x128xbf16> to vector<1x18x128xbf16>
    %6 = tpu.concatenate %1, %3, %5 in 0 : vector<1x18x128xbf16>, vector<4x18x128xbf16>, vector<1x18x128xbf16> -> vector<6x18x128xbf16>
    %7 = vector.extract_strided_slice %6 {offsets = [0, 0, 0], sizes = [6, 16, 128], strides = [1, 1, 1]} : vector<6x18x128xbf16> to vector<6x16x128xbf16>
    %8 = vector.extract_strided_slice %6 {offsets = [0, 1, 0], sizes = [6, 16, 128], strides = [1, 1, 1]} : vector<6x18x128xbf16> to vector<6x16x128xbf16>
    %9 = vector.extract_strided_slice %6 {offsets = [0, 2, 0], sizes = [6, 16, 128], strides = [1, 1, 1]} : vector<6x18x128xbf16> to vector<6x16x128xbf16>
    %10 = tpu.concatenate %7, %8, %9 in 2 : vector<6x16x128xbf16>, vector<6x16x128xbf16>, vector<6x16x128xbf16> -> vector<6x16x384xbf16>
    %11 = vector.extract_strided_slice %10 {offsets = [0, 0, 0], sizes = [4, 16, 384], strides = [1, 1, 1]} : vector<6x16x384xbf16> to vector<4x16x384xbf16>
    %12 = vector.shape_cast %11 : vector<4x16x384xbf16> to vector<64x384xbf16>
    %c0_11 = arith.constant 0 : index
    %c0_12 = arith.constant 0 : index
    %c0_13 = arith.constant 0 : index
    %13 = vector.load %arg5[%c0_11, %c0_12, %c0_13] : memref<3x384x128xbf16, #tpu.memory_space<vmem>>, vector<1x384x128xbf16>
    %14 = vector.shape_cast %13 : vector<1x384x128xbf16> to vector<384x128xbf16>
    %cst = arith.constant dense<0.000000e+00> : vector<64x128xf32>
    %15 = tpu.matmul %12, %14, %cst {dimension_numbers = #tpu.dot_dimension_numbers<[1], [0], [0], [1], [0, 0, 1, 1], [], []>} : vector<64x384xbf16>, vector<384x128xbf16>, vector<64x128xf32> -> vector<64x128xf32>
    %16 = vector.extract_strided_slice %10 {offsets = [1, 0, 0], sizes = [4, 16, 384], strides = [1, 1, 1]} : vector<6x16x384xbf16> to vector<4x16x384xbf16>
    %17 = vector.shape_cast %16 : vector<4x16x384xbf16> to vector<64x384xbf16>
    %c1 = arith.constant 1 : index
    %c0_14 = arith.constant 0 : index
    %c0_15 = arith.constant 0 : index
    %18 = vector.load %arg5[%c1, %c0_14, %c0_15] : memref<3x384x128xbf16, #tpu.memory_space<vmem>>, vector<1x384x128xbf16>
    %19 = vector.shape_cast %18 : vector<1x384x128xbf16> to vector<384x128xbf16>
    %cst_16 = arith.constant dense<0.000000e+00> : vector<64x128xf32>
    %20 = tpu.matmul %17, %19, %cst_16 {dimension_numbers = #tpu.dot_dimension_numbers<[1], [0], [0], [1], [0, 0, 1, 1], [], []>} : vector<64x384xbf16>, vector<384x128xbf16>, vector<64x128xf32> -> vector<64x128xf32>
    %21 = arith.addf %15, %20 : vector<64x128xf32>
    %22 = vector.extract_strided_slice %10 {offsets = [2, 0, 0], sizes = [4, 16, 384], strides = [1, 1, 1]} : vector<6x16x384xbf16> to vector<4x16x384xbf16>
    %23 = vector.shape_cast %22 : vector<4x16x384xbf16> to vector<64x384xbf16>
    %c2 = arith.constant 2 : index
    %c0_17 = arith.constant 0 : index
    %c0_18 = arith.constant 0 : index
    %24 = vector.load %arg5[%c2, %c0_17, %c0_18] : memref<3x384x128xbf16, #tpu.memory_space<vmem>>, vector<1x384x128xbf16>
    %25 = vector.shape_cast %24 : vector<1x384x128xbf16> to vector<384x128xbf16>
    %cst_19 = arith.constant dense<0.000000e+00> : vector<64x128xf32>
    %26 = tpu.matmul %23, %25, %cst_19 {dimension_numbers = #tpu.dot_dimension_numbers<[1], [0], [0], [1], [0, 0, 1, 1], [], []>} : vector<64x384xbf16>, vector<384x128xbf16>, vector<64x128xf32> -> vector<64x128xf32>
    %27 = arith.addf %21, %26 : vector<64x128xf32>
    %cst_20 = arith.constant dense<0.000000e+00> : vector<128xf32>
    %28 = vector.multi_reduction <add>, %27, %cst_20 [0] : vector<64x128xf32> to vector<128xf32>
    %29 = vector.shape_cast %28 : vector<128xf32> to vector<1x128xf32>
    %cst_21 = arith.constant 1.562500e-02 : f32
    %30 = vector.broadcast %cst_21 : f32 to vector<1x128xf32>
    %31 = arith.mulf %29, %30 : vector<1x128xf32>
    %32 = vector.broadcast %31 : vector<1x128xf32> to vector<64x128xf32>
    %33 = arith.subf %27, %32 : vector<64x128xf32>
    %34 = arith.mulf %33, %33 : vector<64x128xf32>
    %cst_22 = arith.constant dense<0.000000e+00> : vector<128xf32>
    %35 = vector.multi_reduction <add>, %34, %cst_22 [0] : vector<64x128xf32> to vector<128xf32>
    %36 = vector.shape_cast %35 : vector<128xf32> to vector<1x128xf32>
    %37 = tpu.concatenate %29, %36 in 0 : vector<1x128xf32>, vector<1x128xf32> -> vector<2x128xf32>
    %c0_23 = arith.constant 0 : index
    %c0_24 = arith.constant 0 : index
    %c0_25 = arith.constant 0 : index
    %c0_26 = arith.constant 0 : index
    %38 = vector.load %arg7[%c0_23, %c0_24, %c0_25, %c0_26] : memref<1x1x2x128xf32, #tpu.memory_space<vmem>>, vector<1x1x2x128xf32>
    %39 = vector.shape_cast %38 : vector<1x1x2x128xf32> to vector<2x128xf32>
    %40 = vector.shape_cast %37 : vector<2x128xf32> to vector<1x1x2x128xf32>
    tpu.vector_store %arg7[%c0_23, %c0_24, %c0_25, %c0_26], %40 {strides = array<i32>} : memref<1x1x2x128xf32, #tpu.memory_space<vmem>>, vector<1x1x2x128xf32>,
    %41 = vector.shape_cast %27 : vector<64x128xf32> to vector<4x16x128xf32>
    %42 = arith.truncf %41 : vector<4x16x128xf32> to vector<4x16x128xbf16>
    %43 = vector.extract_strided_slice %42 {offsets = [0, 0, 0], sizes = [4, 1, 128], strides = [1, 1, 1]} : vector<4x16x128xbf16> to vector<4x1x128xbf16>
    %44 = vector.extract_strided_slice %42 {offsets = [0, 15, 0], sizes = [4, 1, 128], strides = [1, 1, 1]} : vector<4x16x128xbf16> to vector<4x1x128xbf16>
    %45 = tpu.concatenate %43, %42, %44 in 1 : vector<4x1x128xbf16>, vector<4x16x128xbf16>, vector<4x1x128xbf16> -> vector<4x18x128xbf16>
    %c0_27 = arith.constant 0 : index
    %c0_28 = arith.constant 0 : index
    %c0_29 = arith.constant 0 : index
    %c0_30 = arith.constant 0 : index
    %46 = vector.load %arg6[%c0_27, %c0_28, %c0_29, %c0_30] : memref<1x4x18x128xbf16, #tpu.memory_space<vmem>>, vector<1x4x18x128xbf16>
    %47 = vector.shape_cast %46 : vector<1x4x18x128xbf16> to vector<4x18x128xbf16>
    %48 = vector.shape_cast %45 : vector<4x18x128xbf16> to vector<1x4x18x128xbf16>
    tpu.vector_store %arg6[%c0_27, %c0_28, %c0_29, %c0_30], %48 {strides = array<i32>} : memref<1x4x18x128xbf16, #tpu.memory_space<vmem>>, vector<1x4x18x128xbf16>,
    return
  }
  func.func @transform_0(%arg0: i32, %arg1: i32) -> (i32, i32, i32, i32) {
    %c4_i32 = arith.constant 4 : i32
    %0 = arith.muli %arg1, %c4_i32 : i32
    %c1_i32 = arith.constant 1 : i32
    %1 = arith.subi %0, %c1_i32 : i32
    %c0_i32 = arith.constant 0 : i32
    %2 = arith.maxsi %1, %c0_i32 : i32
    %c0_i32_0 = arith.constant 0 : i32
    %c0_i32_1 = arith.constant 0 : i32
    %c0_i32_2 = arith.constant 0 : i32
    return %arg0, %2, %c0_i32_0, %c0_i32_1 : i32, i32, i32, i32
  }
  func.func @transform_1(%arg0: i32, %arg1: i32) -> (i32, i32, i32, i32) {
    %c0_i32 = arith.constant 0 : i32
    %c0_i32_0 = arith.constant 0 : i32
    %c0_i32_1 = arith.constant 0 : i32
    return %arg0, %arg1, %c0_i32, %c0_i32_0 : i32, i32, i32, i32
  }
  func.func @transform_2(%arg0: i32, %arg1: i32) -> (i32, i32, i32, i32) {
    %c1_i32 = arith.constant 1 : i32
    %0 = arith.addi %arg1, %c1_i32 : i32
    %c4_i32 = arith.constant 4 : i32
    %1 = arith.muli %0, %c4_i32 : i32
    %c15_i32 = arith.constant 15 : i32
    %2 = arith.minsi %1, %c15_i32 : i32
    %c0_i32 = arith.constant 0 : i32
    %c0_i32_0 = arith.constant 0 : i32
    %c0_i32_1 = arith.constant 0 : i32
    return %arg0, %2, %c0_i32, %c0_i32_0 : i32, i32, i32, i32
  }
  func.func @transform_3(%arg0: i32, %arg1: i32) -> (i32, i32, i32) {
    %c0_i32 = arith.constant 0 : i32
    %c0_i32_0 = arith.constant 0 : i32
    %c0_i32_1 = arith.constant 0 : i32
    %c0_i32_2 = arith.constant 0 : i32
    return %c0_i32, %c0_i32_0, %c0_i32_1 : i32, i32, i32
  }
  func.func @transform_4(%arg0: i32, %arg1: i32) -> (i32, i32, i32, i32) {
    %c0_i32 = arith.constant 0 : i32
    %c0_i32_0 = arith.constant 0 : i32
    %c0_i32_1 = arith.constant 0 : i32
    return %arg0, %arg1, %c0_i32, %c0_i32_0 : i32, i32, i32, i32
  }
  func.func @transform_5(%arg0: i32, %arg1: i32) -> (i32, i32, i32, i32) {
    %c0_i32 = arith.constant 0 : i32
    %c0_i32_0 = arith.constant 0 : i32
    %c0_i32_1 = arith.constant 0 : i32
    return %arg0, %arg1, %c0_i32, %c0_i32_0 : i32, i32, i32, i32
  }
}

module attributes {stable_mosaic.version = 11 : i64} {
  func.func @_bn_relu_kernel(%arg0: i32, %arg1: i32, %arg2: memref<1x4x16x128xbf16, #tpu.memory_space<vmem>>, %arg3: memref<1x1x128xf32, #tpu.memory_space<vmem>>, %arg4: memref<1x1x128xf32, #tpu.memory_space<vmem>>, %arg5: memref<1x4x16x128xf32, #tpu.memory_space<vmem>>) attributes {dimension_semantics = [#tpu.dimension_semantics<parallel>, #tpu.dimension_semantics<parallel>], iteration_bounds = array<i64: 2, 4>, scalar_prefetch = 0 : i64, scratch_operands = 0 : i64, tpu.core_type = #tpu.core_type<tc>, window_params = [{transform_indices = @transform_0, window_bounds = array<i64: 1, 4, 16, 128>}, {pipeline_mode = #tpu.pipeline_mode<synchronous>, transform_indices = @transform_1, window_bounds = array<i64: 1, 1, 128>}, {pipeline_mode = #tpu.pipeline_mode<synchronous>, transform_indices = @transform_2, window_bounds = array<i64: 1, 1, 128>}, {transform_indices = @transform_3, window_bounds = array<i64: 1, 4, 16, 128>}]} {
    %c0 = arith.constant 0 : index
    %c0_0 = arith.constant 0 : index
    %c0_1 = arith.constant 0 : index
    %c0_2 = arith.constant 0 : index
    %0 = vector.load %arg2[%c0, %c0_0, %c0_1, %c0_2] : memref<1x4x16x128xbf16, #tpu.memory_space<vmem>>, vector<1x4x16x128xbf16>
    %1 = vector.shape_cast %0 : vector<1x4x16x128xbf16> to vector<4x16x128xbf16>
    %2 = arith.extf %1 : vector<4x16x128xbf16> to vector<4x16x128xf32>
    %c0_3 = arith.constant 0 : index
    %c0_4 = arith.constant 0 : index
    %c0_5 = arith.constant 0 : index
    %3 = vector.load %arg3[%c0_3, %c0_4, %c0_5] : memref<1x1x128xf32, #tpu.memory_space<vmem>>, vector<1x1x128xf32>
    %4 = vector.broadcast %3 : vector<1x1x128xf32> to vector<4x16x128xf32>
    %5 = arith.mulf %2, %4 : vector<4x16x128xf32>
    %c0_6 = arith.constant 0 : index
    %c0_7 = arith.constant 0 : index
    %c0_8 = arith.constant 0 : index
    %6 = vector.load %arg4[%c0_6, %c0_7, %c0_8] : memref<1x1x128xf32, #tpu.memory_space<vmem>>, vector<1x1x128xf32>
    %7 = vector.broadcast %6 : vector<1x1x128xf32> to vector<4x16x128xf32>
    %8 = arith.addf %5, %7 : vector<4x16x128xf32>
    %cst = arith.constant 0.000000e+00 : f32
    %9 = vector.broadcast %cst : f32 to vector<4x16x128xf32>
    %10 = arith.maximumf %8, %9 : vector<4x16x128xf32>
    %c0_9 = arith.constant 0 : index
    %c0_10 = arith.constant 0 : index
    %c0_11 = arith.constant 0 : index
    %c0_12 = arith.constant 0 : index
    %11 = vector.load %arg5[%c0_9, %c0_10, %c0_11, %c0_12] : memref<1x4x16x128xf32, #tpu.memory_space<vmem>>, vector<1x4x16x128xf32>
    %12 = vector.shape_cast %11 : vector<1x4x16x128xf32> to vector<4x16x128xf32>
    %13 = vector.shape_cast %10 : vector<4x16x128xf32> to vector<1x4x16x128xf32>
    tpu.vector_store %arg5[%c0_9, %c0_10, %c0_11, %c0_12], %13 {strides = array<i32>} : memref<1x4x16x128xf32, #tpu.memory_space<vmem>>, vector<1x4x16x128xf32>,
    return
  }
  func.func @transform_0(%arg0: i32, %arg1: i32) -> (i32, i32, i32, i32) {
    %c0_i32 = arith.constant 0 : i32
    %c0_i32_0 = arith.constant 0 : i32
    %c0_i32_1 = arith.constant 0 : i32
    return %arg0, %arg1, %c0_i32, %c0_i32_0 : i32, i32, i32, i32
  }
  func.func @transform_1(%arg0: i32, %arg1: i32) -> (i32, i32, i32) {
    %c0_i32 = arith.constant 0 : i32
    %c0_i32_0 = arith.constant 0 : i32
    %c0_i32_1 = arith.constant 0 : i32
    %c0_i32_2 = arith.constant 0 : i32
    return %c0_i32, %c0_i32_0, %c0_i32_1 : i32, i32, i32
  }
  func.func @transform_2(%arg0: i32, %arg1: i32) -> (i32, i32, i32) {
    %c0_i32 = arith.constant 0 : i32
    %c0_i32_0 = arith.constant 0 : i32
    %c0_i32_1 = arith.constant 0 : i32
    %c0_i32_2 = arith.constant 0 : i32
    return %c0_i32, %c0_i32_0, %c0_i32_1 : i32, i32, i32
  }
  func.func @transform_3(%arg0: i32, %arg1: i32) -> (i32, i32, i32, i32) {
    %c0_i32 = arith.constant 0 : i32
    %c0_i32_0 = arith.constant 0 : i32
    %c0_i32_1 = arith.constant 0 : i32
    return %arg0, %arg1, %c0_i32, %c0_i32_0 : i32, i32, i32, i32
  }
}

module attributes {stable_mosaic.version = 11 : i64} {
  func.func @kernel(%arg0: i32, %arg1: i32, %arg2: memref<1x1x18x128xbf16, #tpu.memory_space<vmem>>, %arg3: memref<1x4x18x128xbf16, #tpu.memory_space<vmem>>, %arg4: memref<1x1x18x128xbf16, #tpu.memory_space<vmem>>, %arg5: memref<3x384x128xbf16, #tpu.memory_space<vmem>>, %arg6: memref<1x1x128xf32, #tpu.memory_space<vmem>>, %arg7: memref<1x1x128xf32, #tpu.memory_space<vmem>>, %arg8: memref<1x4x16x128xbf16, #tpu.memory_space<vmem>>, %arg9: memref<1x1x2x128xf32, #tpu.memory_space<vmem>>) attributes {dimension_semantics = [#tpu.dimension_semantics<parallel>, #tpu.dimension_semantics<parallel>], iteration_bounds = array<i64: 2, 4>, scalar_prefetch = 0 : i64, scratch_operands = 0 : i64, tpu.core_type = #tpu.core_type<tc>, window_params = [{transform_indices = @transform_0, window_bounds = array<i64: 1, 1, 18, 128>}, {transform_indices = @transform_1, window_bounds = array<i64: 1, 4, 18, 128>}, {transform_indices = @transform_2, window_bounds = array<i64: 1, 1, 18, 128>}, {pipeline_mode = #tpu.pipeline_mode<synchronous>, transform_indices = @transform_3, window_bounds = array<i64: 3, 384, 128>}, {pipeline_mode = #tpu.pipeline_mode<synchronous>, transform_indices = @transform_4, window_bounds = array<i64: 1, 1, 128>}, {pipeline_mode = #tpu.pipeline_mode<synchronous>, transform_indices = @transform_5, window_bounds = array<i64: 1, 1, 128>}, {transform_indices = @transform_6, window_bounds = array<i64: 1, 4, 16, 128>}, {transform_indices = @transform_7, window_bounds = array<i64: 1, 1, 2, 128>}]} {
    %c0 = arith.constant 0 : index
    %c0_0 = arith.constant 0 : index
    %c0_1 = arith.constant 0 : index
    %c0_2 = arith.constant 0 : index
    %0 = vector.load %arg2[%c0, %c0_0, %c0_1, %c0_2] : memref<1x1x18x128xbf16, #tpu.memory_space<vmem>>, vector<1x1x18x128xbf16>
    %1 = vector.shape_cast %0 : vector<1x1x18x128xbf16> to vector<1x18x128xbf16>
    %c0_3 = arith.constant 0 : index
    %c0_4 = arith.constant 0 : index
    %c0_5 = arith.constant 0 : index
    %c0_6 = arith.constant 0 : index
    %2 = vector.load %arg3[%c0_3, %c0_4, %c0_5, %c0_6] : memref<1x4x18x128xbf16, #tpu.memory_space<vmem>>, vector<1x4x18x128xbf16>
    %3 = vector.shape_cast %2 : vector<1x4x18x128xbf16> to vector<4x18x128xbf16>
    %c0_7 = arith.constant 0 : index
    %c0_8 = arith.constant 0 : index
    %c0_9 = arith.constant 0 : index
    %c0_10 = arith.constant 0 : index
    %4 = vector.load %arg4[%c0_7, %c0_8, %c0_9, %c0_10] : memref<1x1x18x128xbf16, #tpu.memory_space<vmem>>, vector<1x1x18x128xbf16>
    %5 = vector.shape_cast %4 : vector<1x1x18x128xbf16> to vector<1x18x128xbf16>
    %6 = tpu.concatenate %1, %3, %5 in 0 : vector<1x18x128xbf16>, vector<4x18x128xbf16>, vector<1x18x128xbf16> -> vector<6x18x128xbf16>
    %7 = arith.extf %6 : vector<6x18x128xbf16> to vector<6x18x128xf32>
    %c0_11 = arith.constant 0 : index
    %c0_12 = arith.constant 0 : index
    %c0_13 = arith.constant 0 : index
    %8 = vector.load %arg6[%c0_11, %c0_12, %c0_13] : memref<1x1x128xf32, #tpu.memory_space<vmem>>, vector<1x1x128xf32>
    %9 = vector.broadcast %8 : vector<1x1x128xf32> to vector<6x18x128xf32>
    %10 = arith.mulf %7, %9 : vector<6x18x128xf32>
    %c0_14 = arith.constant 0 : index
    %c0_15 = arith.constant 0 : index
    %c0_16 = arith.constant 0 : index
    %11 = vector.load %arg7[%c0_14, %c0_15, %c0_16] : memref<1x1x128xf32, #tpu.memory_space<vmem>>, vector<1x1x128xf32>
    %12 = vector.broadcast %11 : vector<1x1x128xf32> to vector<6x18x128xf32>
    %13 = arith.addf %10, %12 : vector<6x18x128xf32>
    %cst = arith.constant 0.000000e+00 : f32
    %14 = vector.broadcast %cst : f32 to vector<6x18x128xf32>
    %15 = arith.maximumf %13, %14 : vector<6x18x128xf32>
    %16 = arith.truncf %15 : vector<6x18x128xf32> to vector<6x18x128xbf16>
    %17 = vector.extract_strided_slice %16 {offsets = [0, 0, 0], sizes = [6, 16, 128], strides = [1, 1, 1]} : vector<6x18x128xbf16> to vector<6x16x128xbf16>
    %18 = vector.extract_strided_slice %16 {offsets = [0, 1, 0], sizes = [6, 16, 128], strides = [1, 1, 1]} : vector<6x18x128xbf16> to vector<6x16x128xbf16>
    %19 = vector.extract_strided_slice %16 {offsets = [0, 2, 0], sizes = [6, 16, 128], strides = [1, 1, 1]} : vector<6x18x128xbf16> to vector<6x16x128xbf16>
    %20 = tpu.concatenate %17, %18, %19 in 2 : vector<6x16x128xbf16>, vector<6x16x128xbf16>, vector<6x16x128xbf16> -> vector<6x16x384xbf16>
    %21 = vector.extract_strided_slice %20 {offsets = [0, 0, 0], sizes = [4, 16, 384], strides = [1, 1, 1]} : vector<6x16x384xbf16> to vector<4x16x384xbf16>
    %22 = vector.shape_cast %21 : vector<4x16x384xbf16> to vector<64x384xbf16>
    %c0_17 = arith.constant 0 : index
    %c0_18 = arith.constant 0 : index
    %c0_19 = arith.constant 0 : index
    %23 = vector.load %arg5[%c0_17, %c0_18, %c0_19] : memref<3x384x128xbf16, #tpu.memory_space<vmem>>, vector<1x384x128xbf16>
    %24 = vector.shape_cast %23 : vector<1x384x128xbf16> to vector<384x128xbf16>
    %cst_20 = arith.constant dense<0.000000e+00> : vector<64x128xf32>
    %25 = tpu.matmul %22, %24, %cst_20 {dimension_numbers = #tpu.dot_dimension_numbers<[1], [0], [0], [1], [0, 0, 1, 1], [], []>} : vector<64x384xbf16>, vector<384x128xbf16>, vector<64x128xf32> -> vector<64x128xf32>
    %26 = vector.extract_strided_slice %20 {offsets = [1, 0, 0], sizes = [4, 16, 384], strides = [1, 1, 1]} : vector<6x16x384xbf16> to vector<4x16x384xbf16>
    %27 = vector.shape_cast %26 : vector<4x16x384xbf16> to vector<64x384xbf16>
    %c1 = arith.constant 1 : index
    %c0_21 = arith.constant 0 : index
    %c0_22 = arith.constant 0 : index
    %28 = vector.load %arg5[%c1, %c0_21, %c0_22] : memref<3x384x128xbf16, #tpu.memory_space<vmem>>, vector<1x384x128xbf16>
    %29 = vector.shape_cast %28 : vector<1x384x128xbf16> to vector<384x128xbf16>
    %cst_23 = arith.constant dense<0.000000e+00> : vector<64x128xf32>
    %30 = tpu.matmul %27, %29, %cst_23 {dimension_numbers = #tpu.dot_dimension_numbers<[1], [0], [0], [1], [0, 0, 1, 1], [], []>} : vector<64x384xbf16>, vector<384x128xbf16>, vector<64x128xf32> -> vector<64x128xf32>
    %31 = arith.addf %25, %30 : vector<64x128xf32>
    %32 = vector.extract_strided_slice %20 {offsets = [2, 0, 0], sizes = [4, 16, 384], strides = [1, 1, 1]} : vector<6x16x384xbf16> to vector<4x16x384xbf16>
    %33 = vector.shape_cast %32 : vector<4x16x384xbf16> to vector<64x384xbf16>
    %c2 = arith.constant 2 : index
    %c0_24 = arith.constant 0 : index
    %c0_25 = arith.constant 0 : index
    %34 = vector.load %arg5[%c2, %c0_24, %c0_25] : memref<3x384x128xbf16, #tpu.memory_space<vmem>>, vector<1x384x128xbf16>
    %35 = vector.shape_cast %34 : vector<1x384x128xbf16> to vector<384x128xbf16>
    %cst_26 = arith.constant dense<0.000000e+00> : vector<64x128xf32>
    %36 = tpu.matmul %33, %35, %cst_26 {dimension_numbers = #tpu.dot_dimension_numbers<[1], [0], [0], [1], [0, 0, 1, 1], [], []>} : vector<64x384xbf16>, vector<384x128xbf16>, vector<64x128xf32> -> vector<64x128xf32>
    %37 = arith.addf %31, %36 : vector<64x128xf32>
    %cst_27 = arith.constant dense<0.000000e+00> : vector<128xf32>
    %38 = vector.multi_reduction <add>, %37, %cst_27 [0] : vector<64x128xf32> to vector<128xf32>
    %39 = vector.shape_cast %38 : vector<128xf32> to vector<1x128xf32>
    %cst_28 = arith.constant 1.562500e-02 : f32
    %40 = vector.broadcast %cst_28 : f32 to vector<1x128xf32>
    %41 = arith.mulf %39, %40 : vector<1x128xf32>
    %42 = vector.broadcast %41 : vector<1x128xf32> to vector<64x128xf32>
    %43 = arith.subf %37, %42 : vector<64x128xf32>
    %44 = arith.mulf %43, %43 : vector<64x128xf32>
    %cst_29 = arith.constant dense<0.000000e+00> : vector<128xf32>
    %45 = vector.multi_reduction <add>, %44, %cst_29 [0] : vector<64x128xf32> to vector<128xf32>
    %46 = vector.shape_cast %45 : vector<128xf32> to vector<1x128xf32>
    %47 = tpu.concatenate %39, %46 in 0 : vector<1x128xf32>, vector<1x128xf32> -> vector<2x128xf32>
    %c0_30 = arith.constant 0 : index
    %c0_31 = arith.constant 0 : index
    %c0_32 = arith.constant 0 : index
    %c0_33 = arith.constant 0 : index
    %48 = vector.load %arg9[%c0_30, %c0_31, %c0_32, %c0_33] : memref<1x1x2x128xf32, #tpu.memory_space<vmem>>, vector<1x1x2x128xf32>
    %49 = vector.shape_cast %48 : vector<1x1x2x128xf32> to vector<2x128xf32>
    %50 = vector.shape_cast %47 : vector<2x128xf32> to vector<1x1x2x128xf32>
    tpu.vector_store %arg9[%c0_30, %c0_31, %c0_32, %c0_33], %50 {strides = array<i32>} : memref<1x1x2x128xf32, #tpu.memory_space<vmem>>, vector<1x1x2x128xf32>,
    %51 = vector.shape_cast %37 : vector<64x128xf32> to vector<4x16x128xf32>
    %52 = arith.truncf %51 : vector<4x16x128xf32> to vector<4x16x128xbf16>
    %c0_34 = arith.constant 0 : index
    %c0_35 = arith.constant 0 : index
    %c0_36 = arith.constant 0 : index
    %c0_37 = arith.constant 0 : index
    %53 = vector.load %arg8[%c0_34, %c0_35, %c0_36, %c0_37] : memref<1x4x16x128xbf16, #tpu.memory_space<vmem>>, vector<1x4x16x128xbf16>
    %54 = vector.shape_cast %53 : vector<1x4x16x128xbf16> to vector<4x16x128xbf16>
    %55 = vector.shape_cast %52 : vector<4x16x128xbf16> to vector<1x4x16x128xbf16>
    tpu.vector_store %arg8[%c0_34, %c0_35, %c0_36, %c0_37], %55 {strides = array<i32>} : memref<1x4x16x128xbf16, #tpu.memory_space<vmem>>, vector<1x4x16x128xbf16>,
    return
  }
  func.func @transform_0(%arg0: i32, %arg1: i32) -> (i32, i32, i32, i32) {
    %c4_i32 = arith.constant 4 : i32
    %0 = arith.muli %arg1, %c4_i32 : i32
    %c1_i32 = arith.constant 1 : i32
    %1 = arith.subi %0, %c1_i32 : i32
    %c0_i32 = arith.constant 0 : i32
    %2 = arith.maxsi %1, %c0_i32 : i32
    %c0_i32_0 = arith.constant 0 : i32
    %c0_i32_1 = arith.constant 0 : i32
    %c0_i32_2 = arith.constant 0 : i32
    return %arg0, %2, %c0_i32_0, %c0_i32_1 : i32, i32, i32, i32
  }
  func.func @transform_1(%arg0: i32, %arg1: i32) -> (i32, i32, i32, i32) {
    %c0_i32 = arith.constant 0 : i32
    %c0_i32_0 = arith.constant 0 : i32
    %c0_i32_1 = arith.constant 0 : i32
    return %arg0, %arg1, %c0_i32, %c0_i32_0 : i32, i32, i32, i32
  }
  func.func @transform_2(%arg0: i32, %arg1: i32) -> (i32, i32, i32, i32) {
    %c1_i32 = arith.constant 1 : i32
    %0 = arith.addi %arg1, %c1_i32 : i32
    %c4_i32 = arith.constant 4 : i32
    %1 = arith.muli %0, %c4_i32 : i32
    %c15_i32 = arith.constant 15 : i32
    %2 = arith.minsi %1, %c15_i32 : i32
    %c0_i32 = arith.constant 0 : i32
    %c0_i32_0 = arith.constant 0 : i32
    %c0_i32_1 = arith.constant 0 : i32
    return %arg0, %2, %c0_i32, %c0_i32_0 : i32, i32, i32, i32
  }
  func.func @transform_3(%arg0: i32, %arg1: i32) -> (i32, i32, i32) {
    %c0_i32 = arith.constant 0 : i32
    %c0_i32_0 = arith.constant 0 : i32
    %c0_i32_1 = arith.constant 0 : i32
    %c0_i32_2 = arith.constant 0 : i32
    return %c0_i32, %c0_i32_0, %c0_i32_1 : i32, i32, i32
  }
  func.func @transform_4(%arg0: i32, %arg1: i32) -> (i32, i32, i32) {
    %c0_i32 = arith.constant 0 : i32
    %c0_i32_0 = arith.constant 0 : i32
    %c0_i32_1 = arith.constant 0 : i32
    %c0_i32_2 = arith.constant 0 : i32
    return %c0_i32, %c0_i32_0, %c0_i32_1 : i32, i32, i32
  }
  func.func @transform_5(%arg0: i32, %arg1: i32) -> (i32, i32, i32) {
    %c0_i32 = arith.constant 0 : i32
    %c0_i32_0 = arith.constant 0 : i32
    %c0_i32_1 = arith.constant 0 : i32
    %c0_i32_2 = arith.constant 0 : i32
    return %c0_i32, %c0_i32_0, %c0_i32_1 : i32, i32, i32
  }
  func.func @transform_6(%arg0: i32, %arg1: i32) -> (i32, i32, i32, i32) {
    %c0_i32 = arith.constant 0 : i32
    %c0_i32_0 = arith.constant 0 : i32
    %c0_i32_1 = arith.constant 0 : i32
    return %arg0, %arg1, %c0_i32, %c0_i32_0 : i32, i32, i32, i32
  }
  func.func @transform_7(%arg0: i32, %arg1: i32) -> (i32, i32, i32, i32) {
    %c0_i32 = arith.constant 0 : i32
    %c0_i32_0 = arith.constant 0 : i32
    %c0_i32_1 = arith.constant 0 : i32
    return %arg0, %arg1, %c0_i32, %c0_i32_0 : i32, i32, i32, i32
  }
}

</mosaic_0001>

<bundles_post_ra>
// kernel: double_conv.5
= control target key start
LH: loop header
LB: loop body
LE: loop exit
PB: predicated region body
PF: predicated region fallthrough
CT: control target
= control target key end

     0   :  { %s512_s12 = smov 0   ;;  %s514_s13 = smov 0   ;;  %s573_s0 = inlined_call_operand.vmem [shape: bf16[2,16,16,128], index: 0, kind: input, shape index: {}]   ;;  %s574_s1 = inlined_call_operand.vmem [shape: f32[1,1,128], index: 1, kind: input, shape index: {}]   ;;  %s575_s2 = inlined_call_operand.vmem [shape: f32[1,1,128], index: 2, kind: input, shape index: {}]   ;;  %s576_s3 = inlined_call_operand.vmem [shape: f32[2,16,16,128], index: 3, kind: output, shape index: {}]  }
   0x1   :  { %s516_s14 = smov 0   ;;  %s518_s15 = smov 0  }
   0x2   :  { %s520_s16 = smov 0  }
   0x3 LB: > { %s22_s17 = sadd.s32 1, %s482_s14  ;;  %s25_s18 = sadd.s32 1, %s486_s15  ;;  %s490_s16 = sphi %s520_s16, %s13_s16   ;;  %s486_s15 = sphi %s518_s15, %s580_s15   ;;  %s482_s14 = sphi %s516_s14, %s579_s14   ;;  %s478_s13 = sphi %s514_s13, %s578_s13   ;;  %s474_s12 = sphi %s512_s12, %s577_s12  }
   0x4   : > { %p23_p0 = scmp.ge.s32.totalorder %s22_s17, 4  ;;  %p380_p1 = scmp.ge.s32.totalorder %s490_s16, 1 }
   0x5   : > { %p159_p2 = scmp.lt.s32.totalorder %s490_s16, 9 }
   0x6   : > { %s582_s17 = smov (%p23_p0, %s22_s17), 0  ;;  %s584_s18 = smov (!%p23_p0, %s25_s18), %s486_s15 }
   0x7   : > { %p160_p3 = pnand %p380_p1, %p159_p2  ;;  %p27_p4 = scmp.ge.s32.totalorder %s584_s18, 2 }
   0x8   : > { %s381_s19 = sshll.u32 (!%p160_p3), %s474_s12, 2  ;;  %p194_p5 = scmp.lt.s32.totalorder (!%p160_p3), %s478_s13, 1 }
   0x9   : > { %s586_s18 = smov (%p27_p4, %s584_s18), 0  ;;  %163 = sbr.rel (%p160_p3) target bundleno = 32 (0x20), region = 32 }
   0xa   : > { %p196_p6 = scmp.lt.s32.totalorder (!%p160_p3), %s381_s19, 15 }
   0xe   : > { %s588_s13 = smov (!%p194_p5, %s478_s13), 1  ;;  %s590_s19 = smov (!%p196_p6, %s381_s19), 15  ;;  %v389_v0 = vld [vmem:[%s574_s1] ss:$0 sm:$0xff] }
   0xf   : > { %s383_s20 = sshll.u32 %s588_s13, 5  ;;  %s382_s21 = sshll.u32 %s590_s19, 1  ;;  %v390_v9 = vld [vmem:[%s575_s2] ss:$0 sm:$0xff] }
  0x10   : > { %s542_s22 = sadd.s32 %s383_s20, %s382_s21 }
  0x11   : > { %s384_s23 = sshll.u32 %s542_s22, 2  ;;  %s388_s4 = sshll.u32 %s542_s22, 3 }
  0x12   : > { %s202_s26 = scalar_lea.vmem %s573_s0, %s384_s23  ;;  %s213_s7 = scalar_lea.vmem %s576_s3, %s388_s4 }
  0x13   : > { %v394_v1 = vld [vmem:[%s202_s26] sm:$0xff]   ;;  %v409_v2 = vld [vmem:[%s202_s26 + $0x8] sm:$0xff]   ;;  %v410_v3 = vld [vmem:[%s202_s26 + $0x10] sm:$0xff]  }
  0x14   : > { %v395_v4 = vunpack.c.l.bf16 %v394_v1  ;;  %v396_v5 = vunpack.c.h.bf16 %v394_v1  ;;  %v399_v6 = vunpack.c.l.bf16 %v409_v2  ;;  %v400_v7 = vunpack.c.h.bf16 %v409_v2  ;;  %v411_v8 = vld [vmem:[%s202_s26 + $0x18] sm:$0xff]  }
  0x15   : > { %v403_v10 = vunpack.c.l.bf16 %v410_v3  ;;  %v404_v11 = vunpack.c.h.bf16 %v410_v3  ;;  %v407_v12 = vunpack.c.l.bf16 %v411_v8  ;;  %v408_v13 = vunpack.c.h.bf16 %v411_v8 }
  0x16   : > { %v238_v14 = vmul.f32 %v395_v4, %v389_v0  ;;  %v239_v15 = vmul.f32 %v396_v5, %v389_v0  ;;  %v240_v16 = vmul.f32 %v399_v6, %v389_v0  ;;  %v241_v17 = vmul.f32 %v400_v7, %v389_v0 }
  0x17   : > { %v242_v18 = vmul.f32 %v403_v10, %v389_v0  ;;  %v243_v19 = vmul.f32 %v404_v11, %v389_v0  ;;  %v244_v20 = vmul.f32 %v407_v12, %v389_v0  ;;  %v245_v21 = vmul.f32 %v408_v13, %v389_v0 }
  0x18   : > { %v253_v22 = vadd.f32 %v390_v9, %v238_v14  ;;  %v254_v23 = vadd.f32 %v390_v9, %v239_v15  ;;  %v255_v24 = vadd.f32 %v390_v9, %v240_v16  ;;  %v256_v25 = vadd.f32 %v390_v9, %v241_v17 }
  0x19   : > { %v257_v26 = vadd.f32 %v390_v9, %v242_v18  ;;  %v258_v27 = vadd.f32 %v390_v9, %v243_v19  ;;  %v259_v28 = vadd.f32 %v390_v9, %v244_v20  ;;  %v260_v29 = vadd.f32 %v390_v9, %v245_v21 }
  0x1a   : > { %v261_v30 = vmax.f32 %v253_v22, 0.0  ;;  %v262_v31 = vmax.f32 %v254_v23, 0.0  ;;  %v263_v32 = vmax.f32 %v255_v24, 0.0  ;;  %v264_v33 = vmax.f32 %v256_v25, 0.0 }
  0x1b   : > { %v265_v34 = vmax.f32 %v257_v26, 0.0  ;;  %v266_v35 = vmax.f32 %v258_v27, 0.0  ;;  %v267_v36 = vmax.f32 %v259_v28, 0.0  ;;  %v268_v37 = vmax.f32 %v260_v29, 0.0 }
  0x1c   : > { %269 = vst [vmem:[%s213_s7] sm:$0xff] %v261_v30  ;;  %270 = vst [vmem:[%s213_s7 + $0x8] sm:$0xff] %v262_v31 }
  0x1d   : > { %271 = vst [vmem:[%s213_s7 + $0x10] sm:$0xff] %v263_v32  ;;  %272 = vst [vmem:[%s213_s7 + $0x18] sm:$0xff] %v264_v33 }
  0x1e   : > { %273 = vst [vmem:[%s213_s7 + $0x20] sm:$0xff] %v265_v34  ;;  %274 = vst [vmem:[%s213_s7 + $0x28] sm:$0xff] %v266_v35 }
  0x1f   : > { %275 = vst [vmem:[%s213_s7 + $0x30] sm:$0xff] %v267_v36  ;;  %276 = vst [vmem:[%s213_s7 + $0x38] sm:$0xff] %v268_v37 }
  0x20 PF: > { %s13_s16 = sadd.s32 1, %s490_s16   ;;  %s577_s12 = smov %s482_s14 }
  0x21   : > { %p10_p7 = scmp.ge.s32.totalorder %s13_s16, 10   ;;  %s578_s13 = smov %s486_s15 }
  0x22   : > { %s579_s14 = smov %s582_s17  ;;  %s580_s15 = smov %s586_s18 }
  0x23   :  { %12 = sbr.rel (!%p10_p7) target bundleno = 3 (0x3), region = 62 }

// kernel: double_conv.4
= control target key start
LH: loop header
LB: loop body
LE: loop exit
PB: predicated region body
PF: predicated region fallthrough
CT: control target
= control target key end

     0   :  { %s2643_s24 = smov 0   ;;  %s2645_s25 = smov 0   ;;  %s3197_s0 = inlined_call_operand.vmem [shape: bf16[2,16,18,128], index: 0, kind: input, shape index: {}, may-alias: {0,1,2}]   ;;  %s3198_s1 = inlined_call_operand.vmem [shape: bf16[2,16,18,128], index: 1, kind: input, shape index: {}, may-alias: {0,1,2}]   ;;  %s3199_s2 = inlined_call_operand.vmem [shape: bf16[2,16,18,128], index: 2, kind: input, shape index: {}, may-alias: {0,1,2}]   ;;  %s3200_s3 = inlined_call_operand.vmem [shape: bf16[3,384,128], index: 3, kind: input, shape index: {}]   ;;  %s3201_s4 = inlined_call_operand.vmem [shape: f32[1,1,128], index: 4, kind: input, shape index: {}]   ;;  %s3202_s5 = inlined_call_operand.vmem [shape: f32[1,1,128], index: 5, kind: input, shape index: {}]   ;;  %s3203_s6 = inlined_call_operand.vmem [shape: bf16[2,16,16,128], index: 6, kind: output, shape index: {0}]   ;;  %s3204_s7 = inlined_call_operand.vmem [shape: f32[2,4,2,128], index: 7, kind: output, shape index: {1}]  }
   0x1   :  { %s2647_s26 = smov 0   ;;  %s2649_s27 = smov 0  }
   0x2   :  { %s2651_s28 = smov 0  }
   0x3 LB: > { %s27_s29 = sadd.s32 1, %s2593_s26  ;;  %s30_s30 = sadd.s32 1, %s2597_s27  ;;  %s2601_s28 = sphi %s2651_s28, %s18_s28   ;;  %s2597_s27 = sphi %s2649_s27, %s3209_s27   ;;  %s2593_s26 = sphi %s2647_s26, %s3208_s26   ;;  %s2589_s25 = sphi %s2645_s25, %s3207_s25   ;;  %s2585_s24 = sphi %s2643_s24, %s3206_s24  }
   0x4   : > { %p28_p0 = scmp.ge.s32.totalorder %s27_s29, 4  ;;  %p1961_p1 = scmp.ge.s32.totalorder %s2601_s28, 1 }
   0x5   : > { %p328_p2 = scmp.lt.s32.totalorder %s2601_s28, 9 }
   0x6   : > { %s3211_s29 = smov (%p28_p0, %s27_s29), 0  ;;  %s3213_s30 = smov (!%p28_p0, %s30_s30), %s2597_s27 }
   0x7   : > { %p329_p3 = pnand %p1961_p1, %p328_p2  ;;  %p32_p4 = scmp.ge.s32.totalorder %s3213_s30, 2 }
   0x8   : > { %s2679_s10 = sshll.u32 (!%p329_p3), %s2585_s24, 2  ;;  %p408_p5 = scmp.lt.s32.totalorder (!%p329_p3), %s2589_s25, 1 }
   0x9   : > { %s3215_s30 = smov (%p32_p4, %s3213_s30), 0  ;;  %332 = sbr.rel (%p329_p3) target bundleno = 388 (0x184), region = 44 }
   0xa   : > { %p424_p6 = scmp.lt.s32.totalorder (!%p329_p3), %s2679_s10, 15  ;;  %s2170_s9 = sadd.s32 (!%p329_p3), 4, %s2679_s10 }
   0xb   : > { %s2733_s14 = sadd.s32 (!%p329_p3), 4294967295, %s2679_s10  ;;  %p2738_p7 = scmp.lt.s32.totalorder (!%p329_p3), %s2170_s9, 15 }
   0xc   : > { %p406_p8 = scmp.gt.s32.totalorder (!%p329_p3), %s2733_s14, 0  ;;  %p1964_p9 = scmp.lt.s32.totalorder (!%p329_p3), %s2733_s14, 15 }
   0xd   : > { %p462_p10 = scmp.lt.s32.totalorder (!%p329_p3), %s2585_s24, 3 }
   0xe   : > { %v2491_v0 = vld [vmem:[%s3200_s3 + $0x138] sm:$0xff]   ;;  %v2494_v3 = vld [vmem:[%s3200_s3 + $0x130] sm:$0xff]   ;;  %s3217_s25 = smov (!%p408_p5, %s2589_s25), 1  ;;  %v2497_v6 = vld [vmem:[%s3200_s3 + $0x128] sm:$0xff]   ;;  %s3219_s9 = smov (!%p2738_p7, %s2170_s9), 15  ;;  %vm676_vm0 = vcmask 1046528  }
   0xf   : > { %v2492_v1 = vld [vmem:[%s3200_s3 + $0xf8] sm:$0xff]   ;;  %2219 = vmatprep.subr.bf16.mxu0 %v2491_v0  ;;  %v2495_v4 = vld [vmem:[%s3200_s3 + $0xf0] sm:$0xff]   ;;  %s2700_s21 = scalar_select %p424_p6, %s2679_s10, 15  ;;  %v2498_v7 = vld [vmem:[%s3200_s3 + $0xe8] sm:$0xff]   ;;  %vm585_vm1 = vsmask.f32 7424 }
  0x10   : > { %v2493_v2 = vld [vmem:[%s3200_s3 + $0x178] sm:$0xff]   ;;  %2220 = vmatpush3.bf16.msra.mxu0 %v2492_v1  ;;  %v2496_v5 = vld [vmem:[%s3200_s3 + $0x170] sm:$0xff]   ;;  %v2499_v8 = vld [vmem:[%s3200_s3 + $0x168] sm:$0xff]   ;;  %s2712_s13 = smul.u32 48, %s3217_s25  ;;  %s3221_s9 = smov (!%p2738_p7, %s3219_s9), 15  ;;  %vm1720_vm2 = vcmask 1040384  }
  0x11   : > { %2375 = vmatprep.subr.bf16.mxu1 %v2493_v2  ;;  %2221 = vmatprep.subr.bf16.mxu0 %v2494_v3  ;;  %v2500_v9 = vld [vmem:[%s3200_s3 + $0x120] sm:$0xff]   ;;  %s2449_s16 = smul.u32 3, %s2700_s21  ;;  %v2503_v12 = vld [vmem:[%s3200_s3 + $0x118] sm:$0xff]   ;;  %v2506_v15 = vld [vmem:[%s3200_s3 + $0x110] sm:$0xff]   ;;  %s1979_s19 = sshll.u32 %s3217_s25, 5 }
  0x12   : > { %2376 = vmatpush3.bf16.msra.mxu1 %v2493_v2  ;;  %v2501_v10 = vld [vmem:[%s3200_s3 + $0xe0] sm:$0xff]   ;;  %v2505_v13 = vld [vmem:[%s3200_s3 + $0x158] sm:$0xff]   ;;  %v2508_v16 = vld [vmem:[%s3200_s3 + $0x150] sm:$0xff]   ;;  %s2773_s12 = smul.u32 3, %s3221_s9  ;;  %s3225_s24 = smov (!%p462_p10, %s2585_s24), 3 }
  0x13   : > { %2377 = vmatprep.subr.bf16.mxu1 %v2496_v5  ;;  %v2502_v11 = vld [vmem:[%s3200_s3 + $0x160] sm:$0xff]   ;;  %s428_s8 = sadd.s32 %s2449_s16, %s2712_s13  ;;  %v2504_v14 = vld [vmem:[%s3200_s3 + $0xd8] sm:$0xff]   ;;  %v2507_v17 = vld [vmem:[%s3200_s3 + $0xd0] sm:$0xff]   ;;  %s1981_s23 = sshll.u32 %s3217_s25, 2 }
  0x14   : > { %2222 = vmatpush3.bf16.msra.mxu0 %v2495_v4  ;;  %s1971_s20 = sshll.u32 %s428_s8, 2  ;;  %v2509_v18 = vld [vmem:[%s3200_s3 + $0x108] sm:$0xff]   ;;  %v2512_v21 = vld [vmem:[%s3200_s3 + $0x100] sm:$0xff]   ;;  %s442_s22 = sadd.s32 %s2773_s12, %s2712_s13  ;;  %v2515_v34 = vld [vmem:[%s3200_s3 + $0x78] sm:$0xff]  }
  0x15   : > { %2223 = vmatprep.subr.bf16.mxu0 %v2497_v6  ;;  %s2759_s16 = scalar_lea.vmem %s3198_s1, %s1971_s20  ;;  %v2510_v19 = vld [vmem:[%s3200_s3 + $0xc8] sm:$0xff]   ;;  %v2780_v24 = vld [vmem:[%s3201_s4] ss:$0 sm:$0xff]  ;;  %v2517_v45 = vld [vmem:[%s3200_s3 + $0xb8] sm:$0xff]   ;;  %s465_s20 = sadd.s32 %s1981_s23, %s3225_s24 }
  0x16   : > { %2378 = vmatpush3.bf16.msra.mxu1 %v2496_v5  ;;  %v2511_v20 = vld [vmem:[%s3200_s3 + $0x148] sm:$0xff]   ;;  %v2184_v22 = vld [vmem:[%s2759_s16] sm:$0xff]   ;;  %s2783_s8 = scalar_select %p406_p8, %s2733_s14, 0  ;;  %v477_v36 = vld [vmem:[%s2759_s16 + $0x14] sm:$0x1] }
  0x17   : > { %2379 = vmatprep.subr.bf16.mxu1 %v2499_v8  ;;  %v474_v23 = vld [vmem:[%s2759_s16 + $0x8] sm:$0x1]  ;;  %v2513_v25 = vld [vmem:[%s3200_s3 + $0xc0] sm:$0xff]   ;;  %v2185_v27 = vunpack.c.l.bf16 %v2184_v22  ;;  %v2186_v28 = vunpack.c.h.bf16 %v2184_v22  ;;  %v475_v35 = vld [vmem:[%s2759_s16 + $0xc] sm:$0xff]   ;;  %v495_v42 = vunpack.c.l.bf16 %v477_v36 }
  0x18   : > { %2224 = vmatpush3.bf16.msra.mxu0 %v2498_v7  ;;  %v2514_v26 = vld [vmem:[%s3200_s3 + $0x140] sm:$0xff]   ;;  %v492_v29 = vunpack.c.l.bf16 %v474_v23  ;;  %v493_v37 = vunpack.c.l.bf16 %v475_v35  ;;  %v494_v38 = vunpack.c.h.bf16 %v475_v35  ;;  %s3223_s8 = smov (!%p1964_p9, %s2783_s8), 15  ;;  %v2516_v3 = vld [vmem:[%s3200_s3 + $0x38] sm:$0xff]   ;;  %v2523_v36 = vld [vmem:[%s3200_s3 + $0xa8] sm:$0xff]  }
  0x19   : > { %2225 = vmatprep.subr.bf16.mxu0 %v2500_v9  ;;  %v2797_v30 = vld [vmem:[%s3202_s5] ss:$0 sm:$0xff]  ;;  %v515_v31 = vmul.f32 %v2185_v27, %v2780_v24  ;;  %v516_v32 = vmul.f32 %v2186_v28, %v2780_v24  ;;  %v520_v49 = vmul.f32 %v2780_v24, %v495_v42  ;;  %s2447_s14 = smul.u32 3, %s3223_s8  ;;  %v481_v23 = vld [vmem:[%s2759_s16 + $0x24] sm:$0xff]   ;;  %v483_v28 = vld [vmem:[%s2759_s16 + $0x2c] sm:$0x1] }
  0x1a   : > { %2380 = vmatpush3.bf16.msra.mxu1 %v2499_v8  ;;  %v517_v33 = vmul.f32 %v2780_v24, %v492_v29  ;;  %v518_v43 = vmul.f32 %v2780_v24, %v493_v37  ;;  %v519_v44 = vmul.f32 %v2780_v24, %v494_v38  ;;  %v499_v29 = vunpack.c.l.bf16 %v481_v23 }
  0x1b   : > { %2381 = vmatprep.subr.bf16.mxu1 %v2502_v11  ;;  %v540_v39 = vadd.f32 %v2797_v30, %v515_v31  ;;  %v541_v40 = vadd.f32 %v2797_v30, %v516_v32  ;;  %v545_v54 = vadd.f32 %v2797_v30, %v520_v49  ;;  %s2869_s17 = sadd.s32 %s2712_s13, %s2447_s14  ;;  %v2521_v31 = vld [vmem:[%s3200_s3 + $0x68] sm:$0xff]  }
  0x1c   : > { %2226 = vmatpush3.bf16.msra.mxu0 %v2501_v10  ;;  %v542_v41 = vadd.f32 %v2797_v30, %v517_v33  ;;  %v543_v50 = vadd.f32 %v2797_v30, %v518_v43  ;;  %v544_v51 = vadd.f32 %v2797_v30, %v519_v44  ;;  %v2518_v10 = vld [vmem:[%s3200_s3 + $0x70] sm:$0xff]   ;;  %v500_v33 = vunpack.c.h.bf16 %v481_v23  ;;  %s1969_s14 = sshll.u32 %s2869_s17, 2  ;;  %v2522_v43 = vld [vmem:[%s3200_s3 + $0x28] sm:$0xff]   ;;  %v2524_v44 = vld [vmem:[%s3200_s3 + $0x60] sm:$0xff]   ;;  %s1978_s17 = sshll.u32 %s2700_s21, 1 }
  0x1d   : > { %2227 = vmatprep.subr.bf16.mxu0 %v2503_v12  ;;  %v558_v46 = vmax.f32 %v540_v39, 0.0  ;;  %v559_v47 = vmax.f32 %v541_v40, 0.0  ;;  %v563_v62 = vmax.f32 %v545_v54, 0.0  ;;  %v2215_v12 = vld [vmem:[%s2759_s16 + $0x18] sm:$0xff]   ;;  %v524_v40 = vmul.f32 %v2780_v24, %v499_v29  ;;  %s416_s8 = scalar_lea.vmem %s3197_s0, %s1969_s14  ;;  %s456_s10 = sadd.s32 %s1979_s19, %s1978_s17 }
  0x1e   : > { %2382 = vmatpush3.bf16.msra.mxu1 %v2502_v11  ;;  %v560_v48 = vmax.f32 %v542_v41, 0.0  ;;  %v561_v55 = vmax.f32 %v543_v50, 0.0  ;;  %v562_v56 = vmax.f32 %v544_v51, 0.0  ;;  %v525_v41 = vmul.f32 %v2780_v24, %v500_v33  ;;  %s1980_s21 = sshll.u32 %s456_s10, 2  ;;  %s1982_s14 = sshll.u32 %s465_s20, 1 }
  0x1f   : > { %2383 = vmatprep.subr.bf16.mxu1 %v2505_v13  ;;  %v2823_v52 = vpack.c.bf16 %v559_v47, %v558_v46  ;;  %v578_v4 = vpack.c.bf16 %v563_v62, %v563_v62  ;;  %v2526_v47 = vld [vmem:[%s3200_s3 + $0xa0] sm:$0xff]   ;;  %v549_v49 = vadd.f32 %v2797_v30, %v524_v40  ;;  %s3139_s9 = scalar_lea.vmem %s3203_s6, %s1980_s21  ;;  %s467_s12 = scalar_lea.vmem %s3204_s7, %s1982_s14 }
  0x20   : > { %2228 = vmatpush3.bf16.msra.mxu0 %v2504_v14  ;;  %v576_v53 = vpack.c.bf16 %v560_v48, %v560_v48  ;;  %v2830_v63 = vpack.c.bf16 %v562_v56, %v561_v55  ;;  %v550_v50 = vadd.f32 %v2797_v30, %v525_v41 }
  0x21   : > { %2229 = vmatprep.subr.bf16.mxu0 %v2506_v15  ;;  %v599_v57 = vshrl.u32 %v2823_v52, 16  ;;  %v601_v58 = vshll.u32 %v2823_v52, 16  ;;  %v680_v60 = vrot.slane %v2823_v52, 1  ;;  %v684_v9 = vrot.slane %v578_v4, 1  ;;  %v2520_v15 = vld [vmem:[%s3200_s3 + $0xb0] sm:$0xff]  }
  0x22   : > { %2384 = vmatpush3.bf16.msra.mxu1 %v2505_v13  ;;  %v606_v59 = vshll.u32 %v576_v53, 16  ;;  %v681_v61 = vrot.slane %v576_v53, 1  ;;  %v683_v5 = vrot.slane %v2830_v63, 1  ;;  %v611_v7 = vshrl.u32 %v2830_v63, 16  ;;  %v480_v13 = vld [vmem:[%s2759_s16 + $0x20] sm:$0x1] }
  0x23   : > { %2385 = vmatprep.subr.bf16.mxu1 %v2508_v16  ;;  %v603_v0 = vrot.slane %v601_v58, 1  ;;  %v613_v8 = vshll.u32 %v2830_v63, 16  ;;  %v618_v11 = vshll.u32 %v578_v4, 16  ;;  %v498_v22 = vunpack.c.l.bf16 %v480_v13  ;;  %v2525_v58 = vld [vmem:[%s3200_s3 + $0x20] sm:$0xff]   ;;  %s1976_s16 = sshll.u32 %s442_s22, 2 }
  0x24   : > { %2230 = vmatpush3.bf16.msra.mxu0 %v2507_v17  ;;  %v608_v1 = vrot.slane %v606_v59, 1  ;;  %v2833_v2 = vsel %vm676_vm0, %v680_v60, %v681_v61  ;;  %v2189_v17 = vunpack.c.l.bf16 %v2215_v12  ;;  %v567_v55 = vmax.f32 %v549_v49, 0.0  ;;  %s444_s22 = scalar_lea.vmem %s3199_s2, %s1976_s16 }
  0x25   : > { %2231 = vmatprep.subr.bf16.mxu0 %v2509_v18  ;;  %v604_v6 = vor.u32 %v603_v0, %v599_v57  ;;  %2391 = vmatprep.mubr.bf16.mxu1 %v2833_v2  ;;  %v2190_v18 = vunpack.c.h.bf16 %v2215_v12  ;;  %v523_v32 = vmul.f32 %v2780_v24, %v498_v22  ;;  %v568_v56 = vmax.f32 %v550_v50, 0.0  ;;  %v2180_v12 = vld [vmem:[%s416_s8] sm:$0xff]  }
  0x26   : > { %2386 = vmatpush3.bf16.msra.mxu1 %v2508_v16  ;;  %v615_v16 = vrot.slane %v613_v8, 1  ;;  %v2528_v8 = vld [vmem:[%s3200_s3 + $0x18] sm:$0xff]   ;;  %v2181_v23 = vunpack.c.l.bf16 %v2180_v12  ;;  %v2538_v50 = vld [vmem:[%s3200_s3 + $0x80] sm:$0xff]  }
  0x27   : > { %2387 = vmatprep.subr.bf16.mxu1 %v2511_v20  ;;  %v2848_v14 = vsel %vm585_vm1, %v604_v6, %v608_v1  ;;  %v522_v27 = vmul.f32 %v2190_v18, %v2780_v24  ;;  %v548_v39 = vadd.f32 %v2797_v30, %v523_v32  ;;  %v2913_v1 = vpack.c.bf16 %v568_v56, %v567_v55 }
  0x28   : > { %2232 = vmatpush3.bf16.msra.mxu0 %v2510_v19  ;;  %974 = vmatprep.mubr.bf16.mxu0 %v2848_v14  ;;  %v2855_v19 = vsel %vm676_vm0, %v683_v5, %v684_v9  ;;  %v2527_v5 = vld [vmem:[%s3200_s3 + $0x58] sm:$0xff]  }
  0x29   : > { %2233 = vmatprep.subr.bf16.mxu0 %v2512_v21  ;;  %v620_v21 = vrot.slane %v618_v11, 1  ;;  %v547_v38 = vadd.f32 %v2797_v30, %v522_v27  ;;  %v566_v48 = vmax.f32 %v548_v39, 0.0  ;;  %v689_v9 = vrot.slane %v2913_v1, 1  ;;  %v2529_v11 = vld [vmem:[%s3200_s3 + $0x98] sm:$0xff]  }
  0x2a   : > { %2388 = vmatpush3.bf16.msra.mxu1 %v2511_v20  ;;  %v2519_v20 = vld [vmem:[%s3200_s3 + $0x30] sm:$0xff]   ;;  %v637_v18 = vshll.u32 %v2913_v1, 16 }
  0x2b   : > { %2389 = vmatprep.subr.bf16.mxu1 %v2514_v26  ;;  %v565_v46 = vmax.f32 %v547_v38, 0.0  ;;  %v580_v54 = vpack.c.bf16 %v566_v48, %v566_v48 }
  0x2c   : > { %2234 = vmatpush3.bf16.msra.mxu0 %v2513_v25  ;;  %v616_v25 = vor.u32 %v615_v16, %v611_v7  ;;  %v2532_v16 = vld [vmem:[%s3200_s3 + $0x90] sm:$0xff]  }
  0x2d   : > { %2271 = vmatprep.subr.bf16.mxu0 %v2515_v34  ;;  %v501_v34 = vunpack.c.l.bf16 %v483_v28  ;;  %v630_v62 = vshll.u32 %v580_v54, 16  ;;  %v687_v0 = vrot.slane %v580_v54, 1  ;;  %v639_v28 = vrot.slane %v637_v18, 1 }
  0x2e   : > { %2390 = vmatpush3.bf16.msra.mxu1 %v2514_v26  ;;  %v521_v26 = vmul.f32 %v2189_v17, %v2780_v24  ;;  %v2876_v35 = vsel %vm585_vm1, %v616_v25, %v620_v21  ;;  %v635_v17 = vshrl.u32 %v2913_v1, 16  ;;  %v471_v21 = vld [vmem:[%s416_s8 + $0x8] sm:$0x1]  ;;  %v2182_v25 = vunpack.c.h.bf16 %v2180_v12  ;;  %v2192_v12 = vld [vmem:[%s444_s22] sm:$0xff]  }
  0x2f   : > { %2399 = vmatprep.subr.bf16.mxu1 %v2517_v45  ;;  %975 = vmatmul.mubr.bf16.vlgmr.msra.gmra.mxu0 %v2823_v52  ;;  %v526_v42 = vmul.f32 %v2780_v24, %v501_v34  ;;  %v632_v6 = vrot.slane %v630_v62, 1  ;;  %v2531_v34 = vld [vmem:[%s3200_s3 + $0x10] sm:$0xff]  }
  0x30   : > { %2272 = vmatpush3.bf16.msra.mxu0 %v2516_v3  ;;  %v546_v37 = vadd.f32 %v2797_v30, %v521_v26  ;;  %982 = vmatprep.mubr.bf16.mxu0 %v2876_v35  ;;  %v489_v26 = vunpack.c.l.bf16 %v471_v21  ;;  %v513_v32 = vmul.f32 %v2182_v25, %v2780_v24 }
  0x31   : > { %2392 = vmatmul.mubr.bf16.vlgmr.msra.gmra.mxu1 %v2855_v19  ;;  %2273 = vmatprep.subr.bf16.mxu0 %v2518_v10  ;;  %v551_v51 = vadd.f32 %v2797_v30, %v526_v42  ;;  %v2535_v42 = vld [vmem:[%s3200_s3 + $0x88] sm:$0xff]  }
  0x32   : > { %2400 = vmatpush3.bf16.msra.mxu1 %v2517_v45  ;;  %v564_v45 = vmax.f32 %v546_v37, 0.0  ;;  %v514_v33 = vmul.f32 %v2780_v24, %v489_v26  ;;  %v2533_v37 = vld [vmem:[%s3200_s3 + $0x48] sm:$0xff]   ;;  %v538_v39 = vadd.f32 %v2797_v30, %v513_v32  ;;  %v2553_v26 = vld [vmem:[%s3200_s3 + $0x218] sm:$0xff]  }
  0x33   : > { %2401 = vmatprep.subr.bf16.mxu1 %v2520_v15  ;;  %v569_v57 = vmax.f32 %v551_v51, 0.0 }
  0x34   : > { %2274 = vmatpush3.bf16.msra.mxu0 %v2519_v20  ;;  %v2901_v53 = vpack.c.bf16 %v565_v46, %v564_v45  ;;  %v539_v40 = vadd.f32 %v2797_v30, %v514_v33  ;;  %v2534_v46 = vld [vmem:[%s3200_s3 + $0x8] sm:$0xff]   ;;  %v2552_v33 = vld [vmem:[%s3200_s3 + $0x198] sm:$0xff]  }
  0x35   : > { %2275 = vmatprep.subr.bf16.mxu0 %v2521_v31  ;;  %v582_v3 = vpack.c.bf16 %v569_v57, %v569_v57  ;;  %v512_v31 = vmul.f32 %v2181_v23, %v2780_v24  ;;  %v2549_v23 = vld [vmem:[%s3200_s3 + $0x1a0] sm:$0xff]  }
  0x36   : > { %2402 = vmatpush3.bf16.msra.mxu1 %v2520_v15  ;;  %v623_v59 = vshrl.u32 %v2901_v53, 16  ;;  %v625_v60 = vshll.u32 %v2901_v53, 16  ;;  %v686_v61 = vrot.slane %v2901_v53, 1  ;;  %v2530_v15 = vld [vmem:[%s3200_s3 + $0x50] sm:$0xff]   ;;  %v557_v45 = vmax.f32 %v539_v40, 0.0 }
  0x37   : > { %2403 = vmatprep.subr.bf16.mxu1 %v2523_v36  ;;  %983 = vmatmul.mubr.bf16.gmra.mxu0 %v2830_v63  ;;  %v690_v10 = vrot.slane %v582_v3, 1  ;;  %v642_v20 = vshll.u32 %v582_v3, 16  ;;  %v537_v38 = vadd.f32 %v2797_v30, %v512_v31  ;;  %v2541_v3 = vld [vmem:[%s3200_s3 + $0x238] sm:$0xff]  }
  0x38   : > { %2276 = vmatpush3.bf16.msra.mxu0 %v2522_v43  ;;  %v627_v4 = vrot.slane %v625_v60, 1  ;;  %v2919_v7 = vsel %vm676_vm0, %v686_v61, %v687_v0  ;;  %v574_v49 = vpack.c.bf16 %v557_v45, %v557_v45  ;;  %v2539_v61 = vld [vmem:[%s3200_s3 + $0x1f8] sm:$0xff]   ;;  %v2557_v45 = vld [vmem:[%s3200_s3 + $0x1c8] sm:$0xff]  }
  0x39   : > { %2277 = vmatprep.subr.bf16.mxu0 %v2524_v44  ;;  %2395 = vmatprep.mubr.bf16.mxu1 %v2919_v7  ;;  %v2938_v22 = vsel %vm676_vm0, %v689_v9, %v690_v10  ;;  %v644_v29 = vrot.slane %v642_v20, 1  ;;  %v555_v43 = vmax.f32 %v537_v38, 0.0  ;;  %v556_v44 = vmax.f32 %v538_v39, 0.0  ;;  %v2543_v9 = vld [vmem:[%s3200_s3 + $0x1b0] sm:$0xff]   ;;  %v2545_v10 = vld [vmem:[%s3200_s3 + $0x1e8] sm:$0xff]  }
  0x3a   : > { %2404 = vmatpush3.bf16.msra.mxu1 %v2523_v36  ;;  %v628_v13 = vor.u32 %v627_v4, %v623_v59  ;;  %v640_v36 = vor.u32 %v639_v28, %v635_v17  ;;  %v594_v55 = vshll.u32 %v574_v49, 16  ;;  %v678_v57 = vrot.slane %v574_v49, 1  ;;  %v2540_v4 = vld [vmem:[%s3200_s3 + $0x1b8] sm:$0xff]   ;;  %v486_v17 = vld [vmem:[%s444_s22 + $0x8] sm:$0x1] }
  0x3b   : > { %2405 = vmatprep.subr.bf16.mxu1 %v2526_v47  ;;  %2396 = vmatmul.mubr.bf16.gmra.mxu1 %v2938_v22  ;;  %v573_v48 = vpack.c.bf16 %v556_v44, %v555_v43  ;;  %v504_v18 = vunpack.c.l.bf16 %v486_v17 }
  0x3c   : > { %2278 = vmatpush3.bf16.msra.mxu0 %v2525_v58  ;;  %v2941_v27 = vsel %vm585_vm1, %v628_v13, %v632_v6  ;;  %v2959_v41 = vsel %vm585_vm1, %v640_v36, %v644_v29  ;;  %v2537_v58 = vld [vmem:[%s3200_s3] sm:$0xff]   ;;  %v596_v60 = vrot.slane %v594_v55, 1  ;;  %v2542_v6 = vld [vmem:[%s3200_s3 + $0x1f0] sm:$0xff]  }
  0x3d   : > { %2279 = vmatprep.subr.bf16.mxu0 %v2527_v5  ;;  %990 = vmatprep.mubr.bf16.mxu0 %v2941_v27  ;;  %v587_v51 = vshrl.u32 %v573_v48, 16  ;;  %v589_v54 = vshll.u32 %v573_v48, 16  ;;  %v677_v56 = vrot.slane %v573_v48, 1  ;;  %v2548_v13 = vld [vmem:[%s3200_s3 + $0x1e0] sm:$0xff]   ;;  %v529_v25 = vmul.f32 %v2780_v24, %v504_v18  ;;  %v2554_v36 = vld [vmem:[%s3200_s3 + $0x1d0] sm:$0xff]  }
  0x3e   : > { %2406 = vmatpush3.bf16.msra.mxu1 %v2526_v47  ;;  %v2536_v47 = vld [vmem:[%s3200_s3 + $0x40] sm:$0xff]  }
  0x3f   : > { %2407 = vmatprep.subr.bf16.mxu1 %v2529_v11  ;;  %991 = vmatmul.mubr.bf16.gmra.mxu0 %v2901_v53  ;;  %v591_v59 = vrot.slane %v589_v54, 1  ;;  %v679_v62 = vsel %vm676_vm0, %v677_v56, %v678_v57  ;;  %v2560_v54 = vld [vmem:[%s3200_s3 + $0x1c0] sm:$0xff]  }
  0x40   : > { %2280 = vmatpush3.bf16.msra.mxu0 %v2528_v8  ;;  %998 = vmatprep.mubr.bf16.mxu0 %v2959_v41  ;;  %v2544_v8 = vld [vmem:[%s3200_s3 + $0x230] sm:$0xff]   ;;  %v2562_v55 = vld [vmem:[%s3200_s3 + $0x200] sm:$0xff]  }
  0x41   : > { %2281 = vmatprep.subr.bf16.mxu0 %v2530_v15  ;;  %v592_v0 = vor.u32 %v591_v59, %v587_v51  ;;  %2415 = vmatprep.mubr.bf16.mxu1 %v679_v62  ;;  %v2550_v15 = vld [vmem:[%s3200_s3 + $0x220] sm:$0xff]   ;;  %v2558_v51 = vld [vmem:[%s3200_s3 + $0x188] sm:$0xff]  }
  0x42   : > { %2408 = vmatpush3.bf16.msra.mxu1 %v2529_v11  ;;  %v2547_v11 = vld [vmem:[%s3200_s3 + $0x228] sm:$0xff]   ;;  %v2561_v57 = vld [vmem:[%s3200_s3 + $0x180] sm:$0xff]  }
  0x43   : > { %2409 = vmatprep.subr.bf16.mxu1 %v2532_v16  ;;  %v597_v5 = vsel %vm585_vm1, %v592_v0, %v596_v60 }
  0x44   : > { %2282 = vmatpush3.bf16.msra.mxu0 %v2531_v34 }
  0x45   : > { %2283 = vmatprep.subr.bf16.mxu0 %v2533_v37 }
  0x46   : > { %2410 = vmatpush3.bf16.msra.mxu1 %v2532_v16  ;;  %v2194_v16 = vunpack.c.h.bf16 %v2192_v12 }
  0x47   : > { %2411 = vmatprep.subr.bf16.mxu1 %v2535_v42  ;;  %999 = vmatmul.mubr.bf16.gmra.mxu0 %v2913_v1 }
  0x48   : > { %2284 = vmatpush3.bf16.msra.mxu0 %v2534_v46  ;;  %1248 = vmatprep.mubr.bf16.mxu0 %v597_v5  ;;  %v528_v21 = vmul.f32 %v2194_v16, %v2780_v24  ;;  %v2559_v46 = vld [vmem:[%s3200_s3 + $0x208] sm:$0xff]  }
  0x49   : > { %2285 = vmatprep.subr.bf16.mxu0 %v2536_v47 }
  0x4a   : > { %2412 = vmatpush3.bf16.msra.mxu1 %v2535_v42  ;;  %v553_v29 = vadd.f32 %v2797_v30, %v528_v21  ;;  %v2555_v42 = vld [vmem:[%s3200_s3 + $0x190] sm:$0xff]  }
  0x4b   : > { %2413 = vmatprep.subr.bf16.mxu1 %v2538_v50 }
  0x4c   : > { %2286 = vmatpush3.bf16.msra.mxu0 %v2537_v58  ;;  %v571_v32 = vmax.f32 %v553_v29, 0.0 }
  0x4d   : > { %2323 = vmatprep.subr.bf16.mxu0 %v2539_v61 }
  0x4e   : > { %2414 = vmatpush3.bf16.msra.mxu1 %v2538_v50 }
  0x4f   : > { %2423 = vmatprep.subr.bf16.mxu1 %v2541_v3  ;;  %1249 = vmatmul.mubr.bf16.vlgmr.msra.gmra.mxu0 %v573_v48 }
  0x50   : > { %2324 = vmatpush3.bf16.msra.mxu0 %v2540_v4  ;;  %1256 = vmatprep.mubr.bf16.mxu0 %v2848_v14  ;;  %v2193_v14 = vunpack.c.l.bf16 %v2192_v12 }
  0x51   : > { %2416 = vmatmul.mubr.bf16.vlgmr.msra.gmra.mxu1 %v2833_v2  ;;  %2325 = vmatprep.subr.bf16.mxu0 %v2542_v6  ;;  %v2546_v2 = vld [vmem:[%s3200_s3 + $0x1a8] sm:$0xff]  }
  0x52   : > { %2424 = vmatpush3.bf16.msra.mxu1 %v2541_v3  ;;  %2419 = vmatprep.mubr.bf16.mxu1 %v2855_v19  ;;  %v527_v20 = vmul.f32 %v2193_v14, %v2780_v24  ;;  %v554_v24 = vadd.f32 %v2797_v30, %v529_v25 }
  0x53   : > { %2425 = vmatprep.subr.bf16.mxu1 %v2544_v8 }
  0x54   : > { %2326 = vmatpush3.bf16.msra.mxu0 %v2543_v9  ;;  %v552_v28 = vadd.f32 %v2797_v30, %v527_v20  ;;  %v572_v34 = vmax.f32 %v554_v24, 0.0 }
  0x55   : > { %2327 = vmatprep.subr.bf16.mxu0 %v2545_v10 }
  0x56   : > { %2426 = vmatpush3.bf16.msra.mxu1 %v2544_v8  ;;  %v570_v31 = vmax.f32 %v552_v28, 0.0  ;;  %v584_v37 = vpack.c.bf16 %v572_v34, %v572_v34 }
  0x57   : > { %2427 = vmatprep.subr.bf16.mxu1 %v2547_v11  ;;  %1257 = vmatmul.mubr.bf16.gmra.mxu0 %v2823_v52  ;;  %v2551_v52 = vld [vmem:[%s3200_s3 + $0x1d8] sm:$0xff]  }
  0x58   : > { %2328 = vmatpush3.bf16.msra.mxu0 %v2546_v2  ;;  %1264 = vmatprep.mubr.bf16.mxu0 %v2876_v35  ;;  %v583_v30 = vpack.c.bf16 %v571_v32, %v570_v31  ;;  %v693_v43 = vrot.slane %v584_v37, 1  ;;  %v654_v44 = vshll.u32 %v584_v37, 16 }
  0x59   : > { %2420 = vmatmul.mubr.bf16.gmra.mxu1 %v2919_v7  ;;  %2329 = vmatprep.subr.bf16.mxu0 %v2548_v13 }
  0x5a   : > { %2428 = vmatpush3.bf16.msra.mxu1 %v2547_v11  ;;  %2439 = vmatprep.mubr.bf16.mxu1 %v2855_v19  ;;  %v2556_v19 = vld [vmem:[%s3200_s3 + $0x210] sm:$0xff]   ;;  %v692_v38 = vrot.slane %v583_v30, 1  ;;  %v647_v39 = vshrl.u32 %v583_v30, 16  ;;  %v649_v40 = vshll.u32 %v583_v30, 16  ;;  %v656_v49 = vrot.slane %v654_v44, 1 }
  0x5b   : > { %2429 = vmatprep.subr.bf16.mxu1 %v2550_v15 }
  0x5c   : > { %2330 = vmatpush3.bf16.msra.mxu0 %v2549_v23  ;;  %v651_v47 = vrot.slane %v649_v40, 1  ;;  %v694_v48 = vsel %vm676_vm0, %v692_v38, %v693_v43 }
  0x5d   : > { %2331 = vmatprep.subr.bf16.mxu0 %v2551_v52 }
  0x5e   : > { %2430 = vmatpush3.bf16.msra.mxu1 %v2550_v15  ;;  %v652_v50 = vor.u32 %v651_v47, %v647_v39 }
  0x5f   : > { %2431 = vmatprep.subr.bf16.mxu1 %v2553_v26  ;;  %1265 = vmatmul.mubr.bf16.gmra.mxu0 %v2830_v63 }
  0x60   : > { %2332 = vmatpush3.bf16.msra.mxu0 %v2552_v33  ;;  %1272 = vmatprep.mubr.bf16.mxu0 %v2941_v27  ;;  %v657_v56 = vsel %vm585_vm1, %v652_v50, %v656_v49 }
  0x61   : > { %2333 = vmatprep.subr.bf16.mxu0 %v2554_v36 }
  0x62   : > { %2432 = vmatpush3.bf16.msra.mxu1 %v2553_v26 }
  0x63   : > { %2433 = vmatprep.subr.bf16.mxu1 %v2556_v19 }
  0x64   : > { %2334 = vmatpush3.bf16.msra.mxu0 %v2555_v42 }
  0x65   : > { %2335 = vmatprep.subr.bf16.mxu0 %v2557_v45 }
  0x66   : > { %2434 = vmatpush3.bf16.msra.mxu1 %v2556_v19 }
  0x67   : > { %2435 = vmatprep.subr.bf16.mxu1 %v2559_v46  ;;  %1273 = vmatmul.mubr.bf16.gmra.mxu0 %v2901_v53 }
  0x68   : > { %2336 = vmatpush3.bf16.msra.mxu0 %v2558_v51  ;;  %1571 = vmatprep.mubr.bf16.mxu0 %v2876_v35 }
  0x69   : > { %2337 = vmatprep.subr.bf16.mxu0 %v2560_v54 }
  0x6a   : > { %2436 = vmatpush3.bf16.msra.mxu1 %v2559_v46 }
  0x6b   : > { %2437 = vmatprep.subr.bf16.mxu1 %v2562_v55 }
  0x6c   : > { %2338 = vmatpush3.bf16.msra.mxu0 %v2561_v57 }
  0x6e   : > { %2438 = vmatpush3.bf16.msra.mxu1 %v2562_v55 }
  0x6f   : > { %1572 = vmatmul.mubr.bf16.vlgmr.msra.gmra.mxu0 %v2830_v63 }
  0x70   : > { %1579 = vmatprep.mubr.bf16.mxu0 %v2941_v27 }
  0x71   : > { %2440 = vmatmul.mubr.bf16.vlgmr.msra.gmra.mxu1 %v2919_v7 }
  0x72   : > { %2443 = vmatprep.mubr.bf16.mxu1 %v2938_v22 }
  0x77   : > { %1580 = vmatmul.mubr.bf16.gmra.mxu0 %v2901_v53 }
  0x78   : > { %1587 = vmatprep.mubr.bf16.mxu0 %v2959_v41 }
  0x79   : > { %2444 = vmatmul.mubr.bf16.gmra.mxu1 %v694_v48 }
  0x7f   : > { %1588 = vmatmul.mubr.bf16.gmra.mxu0 %v2913_v1 }
  0x80   : > { %1595 = vmatprep.mubr.bf16.mxu0 %v657_v56 }
  0x87   : > { %1596 = vmatmul.mubr.bf16.gmra.mxu0 %v583_v30 }
  0xef   : > { %v2235_v35 = vpop.f32.mrf.mxu0 }
  0xf1   : > { %v2236_v58 = vpop.f32.mrf.mxu0  ;;  %v3084_v61 = vpop.f32.mrf.mxu1 }
  0xf2   : > { %v2237_v59 = vadd.f32 %v2236_v58, %v2235_v35 }
  0xf3   : > { %v2238_v60 = vpop.f32.mrf.mxu0  ;;  %v1041_v22 = vpop.f32.mrf.mxu1 }
  0xf4   : > { %v1042_v50 = vadd.f32 %v2237_v59, %v1041_v22 }
  0xf5   : > { %v2239_v63 = vpop.f32.mrf.mxu0  ;;  %v3086_v3 = vpop.f32.mrf.mxu1 }
  0xf6   : > { %v2240_v43 = vadd.f32 %v2239_v63, %v2238_v60 }
  0xf7   : > { %v2241_v7 = vpop.f32.mrf.mxu0  ;;  %v1044_v5 = vpop.f32.mrf.mxu1 }
  0xf8   : > { %v1045_v51 = vadd.f32 %v2240_v43, %v1044_v5 }
  0xf9   : > { %v2242_v27 = vpop.f32.mrf.mxu0 }
  0xfa   : > { %v2243_v62 = vadd.f32 %v2242_v27, %v2241_v7 }
  0xfb   : > { %v2244_v0 = vpop.f32.mrf.mxu0  ;;  %v3092_v8 = vpop.f32.mrf.mxu1 }
  0xfc   : > { %v1050_v7 = vadd.f32 %v3084_v61, %v2243_v62 }
  0xfd   : > { %v2245_v53 = vpop.f32.mrf.mxu0  ;;  %v3098_v11 = vpop.f32.mrf.mxu1 }
  0xfe   : > { %v2246_v63 = vadd.f32 %v2245_v53, %v2244_v0 }
  0xff   : > { %v2247_v41 = vpop.f32.mrf.mxu0  ;;  %v3104_v13 = vpop.f32.mrf.mxu1 }
 0x101   : > { %v2248_v4 = vpop.f32.mrf.mxu0  ;;  %v3108_v16 = vpop.f32.mrf.mxu1 }
 0x102   : > { %v3088_v1 = vadd.f32 %v2248_v4, %v2247_v41 }
 0x103   : > { %v3090_v6 = vpop.f32.mrf.mxu0 }
 0x105   : > { %v3094_v9 = vpop.f32.mrf.mxu0 }
 0x107   : > { %v3096_v10 = vpop.f32.mrf.mxu0 }
 0x109   : > { %v3100_v2 = vpop.f32.mrf.mxu0 }
 0x10b   : > { %v3102_v12 = vpop.f32.mrf.mxu0 }
 0x10d   : > { %v3106_v15 = vpop.f32.mrf.mxu0 }
 0x10f   : > { %v2287_v14 = vpop.f32.mrf.mxu0 }
 0x111   : > { %v2288_v17 = vpop.f32.mrf.mxu0  ;;  %v2417_v20 = vpop.f32.mrf.mxu1 }
 0x112   : > { %v2289_v46 = vadd.f32 %v2288_v17, %v2287_v14 }
 0x113   : > { %v2290_v18 = vpop.f32.mrf.mxu0  ;;  %v1315_v23 = vpop.f32.mrf.mxu1 }
 0x114   : > { %v1251_v35 = vadd.f32 %v2289_v46, %v1042_v50 }
 0x115   : > { %v2291_v21 = vpop.f32.mrf.mxu0  ;;  %v3110_v26 = vpop.f32.mrf.mxu1 }
 0x116   : > { %v2292_v47 = vadd.f32 %v2291_v21, %v2290_v18  ;;  %v1316_v59 = vadd.f32 %v1315_v23, %v1251_v35 }
 0x117   : > { %v2293_v25 = vpop.f32.mrf.mxu0  ;;  %v1318_v24 = vpop.f32.mrf.mxu1 }
 0x118   : > { %v1254_v58 = vadd.f32 %v2292_v47, %v1045_v51 }
 0x119   : > { %v2294_v52 = vpop.f32.mrf.mxu0  ;;  %v3112_v33 = vpop.f32.mrf.mxu1 }
 0x11a   : > { %v2295_v55 = vadd.f32 %v2294_v52, %v2293_v25  ;;  %v1319_v22 = vadd.f32 %v1318_v24, %v1254_v58  ;;  %v1053_v25 = vadd.f32 %v3086_v3, %v2246_v63  ;;  %v2252_v24 = vadd.f32 %v3094_v9, %v3090_v6 }
 0x11b   : > { %v2296_v28 = vpop.f32.mrf.mxu0  ;;  %v3114_v19 = vpop.f32.mrf.mxu1 }
 0x11c   : > { %v1259_v14 = vadd.f32 %v2295_v55, %v1050_v7  ;;  %v1061_v9 = vadd.f32 %v2252_v24, %v3108_v16 }
 0x11d   : > { %v2297_v29 = vpop.f32.mrf.mxu0  ;;  %v3118_v37 = vpop.f32.mrf.mxu1 }
 0x11e   : > { %v2298_v5 = vadd.f32 %v2297_v29, %v2296_v28  ;;  %v1324_v62 = vadd.f32 %v2417_v20, %v1259_v14  ;;  %v1058_v20 = vadd.f32 %v3088_v1, %v3098_v11  ;;  %v2255_v1 = vadd.f32 %v3100_v2, %v3096_v10 }
 0x11f   : > { %v2299_v31 = vpop.f32.mrf.mxu0  ;;  %v3124_v40 = vpop.f32.mrf.mxu1  ;;  %v2258_v10 = vadd.f32 %v3106_v15, %v3102_v12 }
 0x120   : > { %v1262_v23 = vadd.f32 %v2298_v5, %v1053_v25  ;;  %v1066_v7 = vadd.f32 %v3092_v8, %v2255_v1 }
 0x121   : > { %v2300_v32 = vpop.f32.mrf.mxu0 }
 0x122   : > { %v2301_v28 = vadd.f32 %v2300_v32, %v2299_v31  ;;  %v1327_v50 = vadd.f32 %v3110_v26, %v1262_v23 }
 0x123   : > { %v2302_v34 = vpop.f32.mrf.mxu0 }
 0x125   : > { %v2303_v36 = vpop.f32.mrf.mxu0 }
 0x127   : > { %v3116_v30 = vpop.f32.mrf.mxu0 }
 0x129   : > { %v3120_v38 = vpop.f32.mrf.mxu0 }
 0x12a   : > { %v2307_v26 = vadd.f32 %v3120_v38, %v3116_v30 }
 0x12b   : > { %v3122_v39 = vpop.f32.mrf.mxu0 }
 0x12d   : > { %v3126_v42 = vpop.f32.mrf.mxu0 }
 0x12e   : > { %v2310_v30 = vadd.f32 %v3126_v42, %v3122_v39 }
 0x12f   : > { %v2339_v44 = vpop.f32.mrf.mxu0 }
 0x131   : > { %v2441_v45 = vpop.f32.mrf.mxu1  ;;  %v2340_v48 = vpop.f32.mrf.mxu0 }
 0x132   : > { %v2341_v54 = vadd.f32 %v2340_v48, %v2339_v44 }
 0x133   : > { %v1638_v49 = vpop.f32.mrf.mxu1  ;;  %v2342_v56 = vpop.f32.mrf.mxu0 }
 0x134   : > { %v1639_v41 = vadd.f32 %v2341_v54, %v1638_v49  ;;  %v2304_v49 = vadd.f32 %v2303_v36, %v2302_v34 }
 0x135   : > { %v2442_v57 = vpop.f32.mrf.mxu1  ;;  %v2343_v27 = vpop.f32.mrf.mxu0 }
 0x136   : > { %v2344_v4 = vadd.f32 %v2343_v27, %v2342_v56  ;;  %v3132_v52 = vadd.f32 %v1639_v41, %v1316_v59  ;;  %v1270_v56 = vadd.f32 %v2304_v49, %v1061_v9 }
 0x137   : > { %v1641_v60 = vpop.f32.mrf.mxu1  ;;  %v2345_v17 = vpop.f32.mrf.mxu0 }
 0x138   : > { %v1642_v18 = vadd.f32 %v2344_v4, %v1641_v60  ;;  %v1335_v63 = vadd.f32 %v3124_v40, %v1270_v56  ;;  %v1275_v4 = vadd.f32 %v2307_v26, %v1066_v7 }
 0x139   : > { %v2346_v21 = vpop.f32.mrf.mxu0  ;;  %v2445_v53 = vpop.f32.mrf.mxu1 }
 0x13a   : > { %v3134_v43 = vadd.f32 %v1642_v18, %v1319_v22  ;;  %v2347_v61 = vadd.f32 %v2346_v21, %v2345_v17  ;;  %v1069_v17 = vadd.f32 %v3104_v13, %v2258_v10  ;;  %v1340_v22 = vadd.f32 %v3112_v33, %v1275_v4 }
 0x13b   : > { %v2348_v0 = vpop.f32.mrf.mxu0  ;;  %v1654_v32 = vpop.f32.mrf.mxu1 }
 0x13c   : > { %v2198_v29 = vpack.c.bf16 %v3134_v43, %v3132_v52  ;;  %v1647_v3 = vadd.f32 %v2441_v45, %v2347_v61  ;;  %v1677_v46 = vadd.f32 %v3134_v43, %v3132_v52  ;;  %v1267_v45 = vadd.f32 %v2301_v28, %v1058_v20 }
 0x13d   : > { %v2349_v44 = vpop.f32.mrf.mxu0  ;;  %v2446_v34 = vpop.f32.mrf.mxu1  ;;  %v1278_v5 = vadd.f32 %v2310_v30, %v1069_v17 }
 0x13e   : > { %2199 = vst [vmem:[%s3139_s9] sm:$0xff] %v2198_v29   ;;  %v3150_v47 = vadd.f32 %v1647_v3, %v1324_v62  ;;  %v2350_v48 = vadd.f32 %v2349_v44, %v2348_v0  ;;  %v1332_v36 = vadd.f32 %v3114_v19, %v1267_v45 }
 0x13f   : > { %v2351_v31 = vpop.f32.mrf.mxu0  ;;  %v1657_v41 = vpop.f32.mrf.mxu1  ;;  %v1343_v39 = vadd.f32 %v3118_v37, %v1278_v5 }
 0x140   : > { %v1678_v51 = vadd.f32 %v1677_v46, %v3150_v47  ;;  %v1650_v6 = vadd.f32 %v2442_v57, %v2350_v48 }
 0x141   : > { %v2352_v11 = vpop.f32.mrf.mxu0 }
 0x142   : > { %v1672_v54 = vadd.f32 %v1650_v6, %v1327_v50  ;;  %v2353_v55 = vadd.f32 %v2352_v11, %v2351_v31 }
 0x143   : > { %v2354_v35 = vpop.f32.mrf.mxu0 }
 0x144   : > { %v2203_v58 = vpack.c.bf16 %v1672_v54, %v3150_v47  ;;  %v1655_v57 = vadd.f32 %v2353_v55, %v1654_v32  ;;  %v1679_v27 = vadd.f32 %v1678_v51, %v1672_v54 }
 0x145   : > { %v2355_v16 = vpop.f32.mrf.mxu0 }
 0x146   : > { %2216 = vst [vmem:[%s3139_s9 + $0x8] sm:$0xff] %v2203_v58   ;;  %v1673_v2 = vadd.f32 %v1655_v57, %v1332_v36  ;;  %v2356_v60 = vadd.f32 %v2355_v16, %v2354_v35 }
 0x147   : > { %v2357_v19 = vpop.f32.mrf.mxu0 }
 0x148   : > { %v1680_v38 = vadd.f32 %v1679_v27, %v1673_v2  ;;  %v1658_v14 = vadd.f32 %v2356_v60, %v1657_v41 }
 0x149   : > { %v2358_v8 = vpop.f32.mrf.mxu0 }
 0x14a   : > { %v1674_v59 = vadd.f32 %v1658_v14, %v1335_v63  ;;  %v2359_v12 = vadd.f32 %v2358_v8, %v2357_v19 }
 0x14b   : > { %v2360_v15 = vpop.f32.mrf.mxu0 }
 0x14c   : > { %v2208_v40 = vpack.c.bf16 %v1674_v59, %v1673_v2  ;;  %v1663_v18 = vadd.f32 %v2445_v53, %v2359_v12  ;;  %v1681_v25 = vadd.f32 %v1680_v38, %v1674_v59 }
 0x14d   : > { %v2361_v21 = vpop.f32.mrf.mxu0 }
 0x14e   : > { %2217 = vst [vmem:[%s3139_s9 + $0x10] sm:$0xff] %v2208_v40   ;;  %v1675_v61 = vadd.f32 %v1663_v18, %v1340_v22  ;;  %v2362_v62 = vadd.f32 %v2361_v21, %v2360_v15 }
 0x150   : > { %v1682_v42 = vadd.f32 %v1681_v25, %v1675_v61  ;;  %v1666_v0 = vadd.f32 %v2446_v34, %v2362_v62 }
 0x152   : > { %v1676_v23 = vadd.f32 %v1666_v0, %v1343_v39 }
 0x154   : > { %v1683_v13 = vadd.f32 %v1682_v42, %v1676_v23  ;;  %v2213_v28 = vpack.c.bf16 %v1676_v23, %v1675_v61 }
 0x156   : > { %v1684_v29 = vrot.slane %v1683_v13, 4  ;;  %2218 = vst [vmem:[%s3139_s9 + $0x18] sm:$0xff] %v2213_v28  }
 0x158   : > { %v1685_v3 = vadd.f32 %v1684_v29, %v1683_v13 }
 0x15a   : > { %v1686_v33 = vrot.slane %v1685_v3, 2 }
 0x15c   : > { %v1687_v24 = vadd.f32 %v1686_v33, %v1685_v3 }
 0x15e   : > { %v1688_v44 = vrot.slane %v1687_v24, 1 }
 0x160   : > { %v1689_v20 = vadd.f32 %v1688_v44, %v1687_v24 }
 0x162   : > { %v1690_v53 = vmul.f32 0.015625, %v1689_v20 }
 0x164   : > { %v1691_v46 = vsub.f32 %v3132_v52, %v1690_v53  ;;  %v1692_v48 = vsub.f32 %v3134_v43, %v1690_v53  ;;  %v1693_v49 = vsub.f32 %v3150_v47, %v1690_v53  ;;  %v1695_v37 = vsub.f32 %v1673_v2, %v1690_v53 }
 0x165   : > { %v1697_v31 = vsub.f32 %v1675_v61, %v1690_v53  ;;  %v1694_v32 = vsub.f32 %v1672_v54, %v1690_v53  ;;  %v1696_v9 = vsub.f32 %v1674_v59, %v1690_v53  ;;  %v1698_v52 = vsub.f32 %v1676_v23, %v1690_v53 }
 0x166   : > { %v1699_v50 = vmul.f32 %v1691_v46, %v1691_v46  ;;  %v1700_v45 = vmul.f32 %v1692_v48, %v1692_v48  ;;  %v1701_v51 = vmul.f32 %v1693_v49, %v1693_v49  ;;  %v1703_v55 = vmul.f32 %v1695_v37, %v1695_v37 }
 0x167   : > { %v1702_v1 = vmul.f32 %v1694_v32, %v1694_v32  ;;  %v1704_v35 = vmul.f32 %v1696_v9, %v1696_v9  ;;  %v1705_v34 = vmul.f32 %v1697_v31, %v1697_v31  ;;  %v1706_v36 = vmul.f32 %v1698_v52, %v1698_v52 }
 0x168   : > { %v1707_v6 = vadd.f32 %v1700_v45, %v1699_v50 }
 0x16a   : > { %v1708_v11 = vadd.f32 %v1707_v6, %v1701_v51 }
 0x16c   : > { %v1709_v56 = vadd.f32 %v1708_v11, %v1702_v1 }
 0x16e   : > { %v1710_v43 = vadd.f32 %v1709_v56, %v1703_v55 }
 0x170   : > { %v1711_v47 = vadd.f32 %v1710_v43, %v1704_v35 }
 0x172   : > { %v1712_v26 = vadd.f32 %v1711_v47, %v1705_v34 }
 0x174   : > { %v1713_v54 = vadd.f32 %v1712_v26, %v1706_v36 }
 0x176   : > { %v1714_v58 = vrot.slane %v1713_v54, 4 }
 0x178   : > { %v1715_v57 = vadd.f32 %v1714_v58, %v1713_v54 }
 0x17a   : > { %v1716_v7 = vrot.slane %v1715_v57, 2 }
 0x17c   : > { %v1717_v16 = vadd.f32 %v1716_v7, %v1715_v57 }
 0x17e   : > { %v1718_v10 = vrot.slane %v1717_v16, 1 }
 0x180   : > { %v1719_v2 = vadd.f32 %v1718_v10, %v1717_v16 }
 0x182   : > { %v1721_v27 = vsel %vm1720_vm2, %v1689_v20, %v1719_v2 }
 0x183   : > { %1722 = vst [vmem:[%s467_s12] sm:$0x3] %v1721_v27 }
 0x184 PF: > { %s18_s28 = sadd.s32 1, %s2601_s28   ;;  %s3206_s24 = smov %s2593_s26 }
 0x185   : > { %p15_p11 = scmp.ge.s32.totalorder %s18_s28, 10   ;;  %s3207_s25 = smov %s2597_s27 }
 0x186   : > { %s3208_s26 = smov %s3211_s29  ;;  %s3209_s27 = smov %s3215_s30 }
 0x187   :  { %17 = sbr.rel (!%p15_p11) target bundleno = 3 (0x3), region = 94 }

// kernel: double_conv.3
= control target key start
LH: loop header
LB: loop body
LE: loop exit
PB: predicated region body
PF: predicated region fallthrough
CT: control target
= control target key end

     0   :  { %s2578_s18 = smov 0   ;;  %s2580_s19 = smov 0   ;;  %s3125_s0 = inlined_call_operand.vmem [shape: bf16[2,16,18,128], index: 0, kind: input, shape index: {}, may-alias: {0,1,2}]   ;;  %s3126_s1 = inlined_call_operand.vmem [shape: bf16[2,16,18,128], index: 1, kind: input, shape index: {}, may-alias: {0,1,2}]   ;;  %s3127_s2 = inlined_call_operand.vmem [shape: bf16[2,16,18,128], index: 2, kind: input, shape index: {}, may-alias: {0,1,2}]   ;;  %s3128_s3 = inlined_call_operand.vmem [shape: bf16[3,384,128], index: 3, kind: input, shape index: {}]   ;;  %s3129_s4 = inlined_call_operand.vmem [shape: bf16[2,16,18,128], index: 4, kind: output, shape index: {0}]   ;;  %s3130_s5 = inlined_call_operand.vmem [shape: f32[2,4,2,128], index: 5, kind: output, shape index: {1}]  }
   0x1   :  { %s2582_s20 = smov 0   ;;  %s2584_s21 = smov 0  }
   0x2   :  { %s2586_s22 = smov 0  }
   0x3 LB: > { %s25_s23 = sadd.s32 1, %s2538_s20  ;;  %s28_s24 = sadd.s32 1, %s2542_s21  ;;  %s2546_s22 = sphi %s2586_s22, %s16_s22   ;;  %s2542_s21 = sphi %s2584_s21, %s3141_s21   ;;  %s2538_s20 = sphi %s2582_s20, %s3140_s20   ;;  %s2534_s19 = sphi %s2580_s19, %s3139_s19   ;;  %s2530_s18 = sphi %s2578_s18, %s3138_s18  }
   0x4   : > { %p26_p0 = scmp.ge.s32.totalorder %s25_s23, 4  ;;  %p1930_p1 = scmp.ge.s32.totalorder %s2546_s22, 1 }
   0x5   : > { %p278_p2 = scmp.lt.s32.totalorder %s2546_s22, 9 }
   0x6   : > { %s3143_s23 = smov (%p26_p0, %s25_s23), 0  ;;  %s3145_s24 = smov (!%p26_p0, %s28_s24), %s2542_s21 }
   0x7   : > { %p279_p3 = pnand %p1930_p1, %p278_p2  ;;  %p30_p4 = scmp.ge.s32.totalorder %s3145_s24, 2 }
   0x9   : > { %s3147_s24 = smov (%p30_p4, %s3145_s24), 0  ;;  %282 = sbr.rel (%p279_p3) target bundleno = 388 (0x184), region = 36 }
   0xe   : > { %v2424_v0 = vld [vmem:[%s3128_s3 + $0x138] sm:$0xff]   ;;  %s2619_s29 = sshll.u32 %s2530_s18, 2  ;;  %v2427_v3 = vld [vmem:[%s3128_s3 + $0x130] sm:$0xff]   ;;  %p354_p5 = scmp.lt.s32.totalorder %s2534_s19, 1  ;;  %v2430_v6 = vld [vmem:[%s3128_s3 + $0x128] sm:$0xff]   ;;  %vm566_vm0 = vcmask 1046528  }
   0xf   : > { %v2425_v1 = vld [vmem:[%s3128_s3 + $0xf8] sm:$0xff]   ;;  %2152 = vmatprep.subr.bf16.mxu0 %v2424_v0  ;;  %v2428_v4 = vld [vmem:[%s3128_s3 + $0xf0] sm:$0xff]   ;;  %p370_p6 = scmp.lt.s32.totalorder %s2619_s29, 15  ;;  %v2431_v7 = vld [vmem:[%s3128_s3 + $0xe8] sm:$0xff]   ;;  %s2699_s25 = sadd.s32 4294967295, %s2619_s29  ;;  %vm1610_vm2 = vcmask 1040384  }
  0x10   : > { %v2426_v2 = vld [vmem:[%s3128_s3 + $0x178] sm:$0xff]   ;;  %2153 = vmatpush3.bf16.msra.mxu0 %v2425_v1  ;;  %v2429_v5 = vld [vmem:[%s3128_s3 + $0x170] sm:$0xff]   ;;  %s3149_s19 = smov (!%p354_p5, %s2534_s19), 1  ;;  %v2432_v8 = vld [vmem:[%s3128_s3 + $0x168] sm:$0xff]   ;;  %p352_p7 = scmp.gt.s32.totalorder %s2699_s25, 0 }
  0x11   : > { %2308 = vmatprep.subr.bf16.mxu1 %v2426_v2  ;;  %2154 = vmatprep.subr.bf16.mxu0 %v2427_v3  ;;  %s371_s26 = scalar_select %p370_p6, %s2619_s29, 15  ;;  %v2433_v9 = vld [vmem:[%s3128_s3 + $0x120] sm:$0xff]   ;;  %v2436_v12 = vld [vmem:[%s3128_s3 + $0x118] sm:$0xff]   ;;  %v2439_v15 = vld [vmem:[%s3128_s3 + $0x110] sm:$0xff]   ;;  %vm487_vm1 = vsmask.f32 7424 }
  0x12   : > { %2309 = vmatpush3.bf16.msra.mxu1 %v2426_v2  ;;  %v2434_v10 = vld [vmem:[%s3128_s3 + $0xe0] sm:$0xff]   ;;  %s2658_s9 = smul.u32 48, %s3149_s19  ;;  %v2438_v13 = vld [vmem:[%s3128_s3 + $0x158] sm:$0xff]   ;;  %v2441_v16 = vld [vmem:[%s3128_s3 + $0x150] sm:$0xff]   ;;  %p1933_p8 = scmp.lt.s32.totalorder %s2699_s25, 15 }
  0x13   : > { %2310 = vmatprep.subr.bf16.mxu1 %v2429_v5  ;;  %v2435_v11 = vld [vmem:[%s3128_s3 + $0x160] sm:$0xff]   ;;  %s2382_s12 = smul.u32 3, %s371_s26  ;;  %v2437_v14 = vld [vmem:[%s3128_s3 + $0xd8] sm:$0xff]   ;;  %v2440_v17 = vld [vmem:[%s3128_s3 + $0xd0] sm:$0xff]   ;;  %vm1666_vm3 = vsmask.f32 256 }
  0x14   : > { %2155 = vmatpush3.bf16.msra.mxu0 %v2428_v4  ;;  %v2442_v18 = vld [vmem:[%s3128_s3 + $0x108] sm:$0xff]   ;;  %v2445_v21 = vld [vmem:[%s3128_s3 + $0x100] sm:$0xff]   ;;  %v2450_v30 = vld [vmem:[%s3128_s3 + $0x78] sm:$0xff]   ;;  %s353_s11 = scalar_select %p352_p7, %s2699_s25, 0 }
  0x15   : > { %2156 = vmatprep.subr.bf16.mxu0 %v2430_v6  ;;  %s2673_s27 = sadd.s32 %s2382_s12, %s2658_s9  ;;  %v2443_v19 = vld [vmem:[%s3128_s3 + $0xc8] sm:$0xff]   ;;  %v2446_v22 = vld [vmem:[%s3128_s3 + $0xc0] sm:$0xff]   ;;  %v2454_v38 = vld [vmem:[%s3128_s3 + $0xb8] sm:$0xff]   ;;  %s2151_s25 = sadd.s32 4, %s2619_s29 }
  0x16   : > { %2311 = vmatpush3.bf16.msra.mxu1 %v2429_v5  ;;  %s1940_s7 = sshll.u32 %s2673_s27, 2  ;;  %v2444_v20 = vld [vmem:[%s3128_s3 + $0x148] sm:$0xff]   ;;  %v2447_v23 = vld [vmem:[%s3128_s3 + $0x140] sm:$0xff]   ;;  %v2451_v39 = vld [vmem:[%s3128_s3 + $0x38] sm:$0xff]   ;;  %s3151_s11 = smov (!%p1933_p8, %s353_s11), 15 }
  0x17   : > { %2312 = vmatprep.subr.bf16.mxu1 %v2432_v8  ;;  %s2696_s17 = scalar_lea.vmem %s3126_s1, %s1940_s7  ;;  %v2455_v42 = vld [vmem:[%s3128_s3 + $0x70] sm:$0xff]   ;;  %v2458_v52 = vld [vmem:[%s3128_s3 + $0x68] sm:$0xff]   ;;  %v2461_v57 = vld [vmem:[%s3128_s3 + $0x60] sm:$0xff]   ;;  %s2380_s12 = smul.u32 3, %s3151_s11 }
  0x18   : > { %2157 = vmatpush3.bf16.msra.mxu0 %v2431_v7  ;;  %v2711_v24 = vld [vmem:[%s2696_s17] sm:$0xff]   ;;  %v2449_v25 = vld [vmem:[%s2696_s17 + $0x8] ss:$0 sps:$4 sm:$0x11]   ;;  %v2725_v35 = vld [vmem:[%s2696_s17 + $0xc] sm:$0xff]   ;;  %p2861_p9 = scmp.lt.s32.totalorder %s2151_s25, 15  ;;  %s3039_s13 = scalar_lea.vmem %s3129_s4, %s1940_s7 }
  0x19   : > { %2158 = vmatprep.subr.bf16.mxu0 %v2433_v9  ;;  %v501_v26 = vshrl.u32 %v2711_v24, 16  ;;  %v503_v27 = vshll.u32 %v2711_v24, 16  ;;  %v508_v28 = vshll.u32 %v2449_v25, 16  ;;  %v570_v29 = vrot.slane %v2711_v24, 1  ;;  %v2457_v45 = vld [vmem:[%s3128_s3 + $0xb0] sm:$0xff]   ;;  %v2460_v54 = vld [vmem:[%s3128_s3 + $0xa8] sm:$0xff]   ;;  %vm3027_vm4 = vmand %vm1610_vm2, %vm1666_vm3 }
  0x1a   : > { %2313 = vmatpush3.bf16.msra.mxu1 %v2432_v8  ;;  %v571_v31 = vrot.slane %v2449_v25, 1  ;;  %v2453_v36 = vld [vmem:[%s2696_s17 + $0x14] ss:$0 sps:$4 sm:$0x11]   ;;  %v573_v40 = vrot.slane %v2725_v35, 1  ;;  %v513_v46 = vshrl.u32 %v2725_v35, 16 }
  0x1b   : > { %2314 = vmatprep.subr.bf16.mxu1 %v2435_v11  ;;  %v505_v32 = vrot.slane %v503_v27, 1  ;;  %v510_v33 = vrot.slane %v508_v28, 1  ;;  %v574_v41 = vrot.slane %v2453_v36, 1  ;;  %v515_v47 = vshll.u32 %v2725_v35, 16  ;;  %v2456_v49 = vld [vmem:[%s3128_s3 + $0x30] sm:$0xff]   ;;  %v2459_v55 = vld [vmem:[%s3128_s3 + $0x28] sm:$0xff]  }
  0x1c   : > { %2159 = vmatpush3.bf16.msra.mxu0 %v2434_v10  ;;  %v2722_v34 = vsel %vm566_vm0, %v570_v29, %v571_v31  ;;  %v520_v48 = vshll.u32 %v2453_v36, 16  ;;  %v2463_v58 = vld [vmem:[%s3128_s3 + $0xa0] sm:$0xff]   ;;  %v2784_v59 = vld [vmem:[%s2696_s17 + $0x18] sm:$0xff]   ;;  %v2469_v8 = vld [vmem:[%s2696_s17 + $0x2c] ss:$0 sps:$4 sm:$0x11]  }
  0x1d   : > { %2160 = vmatprep.subr.bf16.mxu0 %v2436_v12  ;;  %v506_v37 = vor.u32 %v505_v32, %v501_v26  ;;  %2324 = vmatprep.mubr.bf16.mxu1 %v2722_v34  ;;  %v2745_v44 = vsel %vm566_vm0, %v573_v40, %v574_v41  ;;  %v517_v50 = vrot.slane %v515_v47, 1  ;;  %v2465_v60 = vld [vmem:[%s2696_s17 + $0x20] ss:$0 sps:$4 sm:$0x11]   ;;  %v525_v62 = vshrl.u32 %v2784_v59, 16  ;;  %v2466_v2 = vld [vmem:[%s3128_s3 + $0x58] sm:$0xff]  }
  0x1e   : > { %2315 = vmatpush3.bf16.msra.mxu1 %v2435_v11  ;;  %v522_v51 = vrot.slane %v520_v48, 1  ;;  %v2462_v61 = vld [vmem:[%s3128_s3 + $0x20] sm:$0xff]   ;;  %v527_v63 = vshll.u32 %v2784_v59, 16  ;;  %v532_v0 = vshll.u32 %v2465_v60, 16  ;;  %v576_v1 = vrot.slane %v2784_v59, 1  ;;  %v2470_v10 = vld [vmem:[%s3128_s3 + $0x98] sm:$0xff]  }
  0x1f   : > { %2316 = vmatprep.subr.bf16.mxu1 %v2438_v13  ;;  %v2741_v43 = vsel %vm487_vm1, %v506_v37, %v510_v33  ;;  %v518_v53 = vor.u32 %v517_v50, %v513_v46  ;;  %v577_v3 = vrot.slane %v2465_v60, 1  ;;  %v2802_v7 = vld [vmem:[%s2696_s17 + $0x24] sm:$0xff]   ;;  %v2467_v11 = vld [vmem:[%s3128_s3 + $0x18] sm:$0xff]   ;;  %s360_s17 = sadd.s32 %s2658_s9, %s2380_s12  ;;  %s3153_s25 = smov (!%p2861_p9, %s2151_s25), 15 }
  0x20   : > { %2161 = vmatpush3.bf16.msra.mxu0 %v2437_v14  ;;  %864 = vmatprep.mubr.bf16.mxu0 %v2741_v43  ;;  %v529_v4 = vrot.slane %v527_v63, 1  ;;  %v534_v5 = vrot.slane %v532_v0, 1  ;;  %v579_v12 = vrot.slane %v2802_v7, 1  ;;  %v2471_v14 = vld [vmem:[%s3128_s3 + $0x50] sm:$0xff]   ;;  %s1938_s12 = sshll.u32 %s360_s17, 2  ;;  %v2474_v25 = vld [vmem:[%s3128_s3 + $0x48] sm:$0xff]  }
  0x21   : > { %2162 = vmatprep.subr.bf16.mxu0 %v2439_v15  ;;  %v2774_v56 = vsel %vm487_vm1, %v518_v53, %v522_v51  ;;  %v2799_v6 = vsel %vm566_vm0, %v576_v1, %v577_v3  ;;  %v2476_v27 = vld [vmem:[%s3128_s3 + $0x88] sm:$0xff]   ;;  %s362_s17 = scalar_lea.vmem %s3125_s0, %s1938_s12  ;;  %v2479_v31 = vld [vmem:[%s3128_s3 + $0x80] sm:$0xff]   ;;  %v2482_v40 = vld [vmem:[%s3128_s3 + $0x1f8] sm:$0xff]   ;;  %s3155_s25 = smov (!%p2861_p9, %s3153_s25), 15 }
  0x22   : > { %2317 = vmatpush3.bf16.msra.mxu1 %v2438_v13  ;;  %v530_v9 = vor.u32 %v529_v4, %v525_v62  ;;  %v580_v13 = vrot.slane %v2469_v8, 1  ;;  %v2475_v28 = vld [vmem:[%s3128_s3 + $0x8] sm:$0xff]   ;;  %v2480_v32 = vld [vmem:[%s362_s17] sm:$0xff]   ;;  %v2484_v47 = vld [vmem:[%s3128_s3 + $0x238] sm:$0xff]   ;;  %s2383_s28 = smul.u32 3, %s3155_s25  ;;  %p408_p10 = scmp.lt.s32.totalorder %s2530_s18, 3 }
  0x23   : > { %2318 = vmatprep.subr.bf16.mxu1 %v2441_v16  ;;  %v2481_v33 = vld [vmem:[%s362_s17 + $0x8] ss:$0 sps:$4 sm:$0x11]   ;;  %v2478_v36 = vld [vmem:[%s3128_s3] sm:$0xff]   ;;  %v489_v37 = vshrl.u32 %v2480_v32, 16  ;;  %v567_v41 = vrot.slane %v2480_v32, 1 }
  0x24   : > { %2163 = vmatpush3.bf16.msra.mxu0 %v2440_v17  ;;  %v2818_v15 = vsel %vm487_vm1, %v530_v9, %v534_v5  ;;  %v2473_v17 = vld [vmem:[%s3128_s3 + $0x90] sm:$0xff]   ;;  %v2483_v50 = vld [vmem:[%s3128_s3 + $0x1b8] sm:$0xff]   ;;  %v2492_v60 = vld [vmem:[%s3128_s3 + $0x1a0] sm:$0xff]   ;;  %s388_s25 = sadd.s32 %s2383_s28, %s2658_s9  ;;  %s3157_s18 = smov (!%p408_p10, %s2530_s18), 3 }
  0x25   : > { %2164 = vmatprep.subr.bf16.mxu0 %v2442_v18  ;;  %v537_v18 = vshrl.u32 %v2802_v7, 16  ;;  %v2487_v51 = vld [vmem:[%s3128_s3 + $0x230] sm:$0xff]   ;;  %v2494_v62 = vld [vmem:[%s3128_s3 + $0x1d8] sm:$0xff]   ;;  %s1945_s16 = sshll.u32 %s388_s25, 2  ;;  %v2502_v1 = vld [vmem:[%s3128_s3 + $0x208] sm:$0xff]   ;;  %s1948_s27 = sshll.u32 %s3149_s19, 2 }
  0x26   : > { %2319 = vmatpush3.bf16.msra.mxu1 %v2441_v16  ;;  %v2822_v16 = vsel %vm566_vm0, %v579_v12, %v580_v13  ;;  %v2485_v53 = vld [vmem:[%s3128_s3 + $0x1f0] sm:$0xff]   ;;  %s390_s10 = scalar_lea.vmem %s3127_s2, %s1945_s16  ;;  %v2501_v3 = vld [vmem:[%s3128_s3 + $0x188] sm:$0xff]   ;;  %v2505_v4 = vld [vmem:[%s3128_s3 + $0x200] sm:$0xff]   ;;  %s411_s7 = sadd.s32 %s1948_s27, %s3157_s18 }
  0x27   : > { %2320 = vmatprep.subr.bf16.mxu1 %v2444_v20  ;;  %v2499_v63 = vld [vmem:[%s3128_s3 + $0x210] sm:$0xff]   ;;  %v2503_v5 = vld [vmem:[%s3128_s3 + $0x1c0] sm:$0xff]   ;;  %s1949_s25 = sshll.u32 %s411_s7, 1 }
  0x28   : > { %2165 = vmatpush3.bf16.msra.mxu0 %v2443_v19  ;;  %v539_v19 = vshll.u32 %v2802_v7, 16  ;;  %v2497_v0 = vld [vmem:[%s3128_s3 + $0x1d0] sm:$0xff]   ;;  %v2506_v9 = vld [vmem:[%s390_s10] sm:$0xff]   ;;  %s413_s29 = scalar_lea.vmem %s3130_s5, %s1949_s25 }
  0x29   : > { %2166 = vmatprep.subr.bf16.mxu0 %v2445_v21  ;;  %v2472_v21 = vld [vmem:[%s3128_s3 + $0x10] sm:$0xff]   ;;  %v551_v13 = vshll.u32 %v2506_v9, 16 }
  0x2a   : > { %2321 = vmatpush3.bf16.msra.mxu1 %v2444_v20  ;;  %v544_v20 = vshll.u32 %v2469_v8, 16  ;;  %v2504_v8 = vld [vmem:[%s3128_s3 + $0x180] sm:$0xff]  }
  0x2b   : > { %2322 = vmatprep.subr.bf16.mxu1 %v2447_v23 }
  0x2c   : > { %2167 = vmatpush3.bf16.msra.mxu0 %v2446_v22  ;;  %v541_v22 = vrot.slane %v539_v19, 1 }
  0x2d   : > { %2204 = vmatprep.subr.bf16.mxu0 %v2450_v30  ;;  %v2477_v30 = vld [vmem:[%s3128_s3 + $0x40] sm:$0xff]  }
  0x2e   : > { %2323 = vmatpush3.bf16.msra.mxu1 %v2447_v23  ;;  %v546_v23 = vrot.slane %v544_v20, 1  ;;  %v542_v26 = vor.u32 %v541_v22, %v537_v18  ;;  %v553_v18 = vrot.slane %v551_v13, 1 }
  0x2f   : > { %2332 = vmatprep.subr.bf16.mxu1 %v2454_v38  ;;  %865 = vmatmul.mubr.bf16.vlgmr.msra.gmra.mxu0 %v2711_v24 }
  0x30   : > { %2205 = vmatpush3.bf16.msra.mxu0 %v2451_v39  ;;  %872 = vmatprep.mubr.bf16.mxu0 %v2774_v56  ;;  %v2847_v29 = vsel %vm487_vm1, %v542_v26, %v546_v23  ;;  %v496_v39 = vshll.u32 %v2481_v33, 16 }
  0x31   : > { %2325 = vmatmul.mubr.bf16.vlgmr.msra.gmra.mxu1 %v2745_v44  ;;  %2206 = vmatprep.subr.bf16.mxu0 %v2455_v42  ;;  %v568_v42 = vrot.slane %v2481_v33, 1 }
  0x32   : > { %2333 = vmatpush3.bf16.msra.mxu1 %v2454_v38  ;;  %2328 = vmatprep.mubr.bf16.mxu1 %v2799_v6  ;;  %v491_v38 = vshll.u32 %v2480_v32, 16  ;;  %v498_v46 = vrot.slane %v496_v39, 1 }
  0x33   : > { %2334 = vmatprep.subr.bf16.mxu1 %v2457_v45  ;;  %v569_v48 = vsel %vm566_vm0, %v567_v41, %v568_v42 }
  0x34   : > { %2207 = vmatpush3.bf16.msra.mxu0 %v2456_v49 }
  0x35   : > { %2208 = vmatprep.subr.bf16.mxu0 %v2458_v52 }
  0x36   : > { %2335 = vmatpush3.bf16.msra.mxu1 %v2457_v45  ;;  %v493_v45 = vrot.slane %v491_v38, 1 }
  0x37   : > { %2336 = vmatprep.subr.bf16.mxu1 %v2460_v54  ;;  %873 = vmatmul.mubr.bf16.gmra.mxu0 %v2725_v35 }
  0x38   : > { %2209 = vmatpush3.bf16.msra.mxu0 %v2459_v55  ;;  %880 = vmatprep.mubr.bf16.mxu0 %v2818_v15  ;;  %v494_v49 = vor.u32 %v493_v45, %v489_v37  ;;  %v2490_v55 = vld [vmem:[%s3128_s3 + $0x228] sm:$0xff]  }
  0x39   : > { %2210 = vmatprep.subr.bf16.mxu0 %v2461_v57  ;;  %2329 = vmatmul.mubr.bf16.gmra.mxu1 %v2822_v16  ;;  %v2489_v57 = vld [vmem:[%s3128_s3 + $0x1a8] sm:$0xff]  }
  0x3a   : > { %2337 = vmatpush3.bf16.msra.mxu1 %v2460_v54  ;;  %2348 = vmatprep.mubr.bf16.mxu1 %v569_v48  ;;  %v499_v52 = vsel %vm487_vm1, %v494_v49, %v498_v46  ;;  %v2486_v54 = vld [vmem:[%s3128_s3 + $0x1b0] sm:$0xff]  }
  0x3b   : > { %2338 = vmatprep.subr.bf16.mxu1 %v2463_v58 }
  0x3c   : > { %2211 = vmatpush3.bf16.msra.mxu0 %v2462_v61  ;;  %v2496_v61 = vld [vmem:[%s3128_s3 + $0x218] sm:$0xff]  }
  0x3d   : > { %2212 = vmatprep.subr.bf16.mxu0 %v2466_v2  ;;  %v2500_v2 = vld [vmem:[%s3128_s3 + $0x1c8] sm:$0xff]  }
  0x3e   : > { %2339 = vmatpush3.bf16.msra.mxu1 %v2463_v58  ;;  %v2493_v58 = vld [vmem:[%s3128_s3 + $0x220] sm:$0xff]  }
  0x3f   : > { %2340 = vmatprep.subr.bf16.mxu1 %v2470_v10  ;;  %881 = vmatmul.mubr.bf16.gmra.mxu0 %v2784_v59 }
  0x40   : > { %2213 = vmatpush3.bf16.msra.mxu0 %v2467_v11  ;;  %888 = vmatprep.mubr.bf16.mxu0 %v2847_v29  ;;  %v582_v11 = vrot.slane %v2506_v9, 1 }
  0x41   : > { %2214 = vmatprep.subr.bf16.mxu0 %v2471_v14 }
  0x42   : > { %2341 = vmatpush3.bf16.msra.mxu1 %v2470_v10  ;;  %v2507_v10 = vld [vmem:[%s390_s10 + $0x8] ss:$0 sps:$4 sm:$0x11]  }
  0x43   : > { %2342 = vmatprep.subr.bf16.mxu1 %v2473_v17  ;;  %v583_v12 = vrot.slane %v2507_v10, 1 }
  0x44   : > { %2215 = vmatpush3.bf16.msra.mxu0 %v2472_v21 }
  0x45   : > { %2216 = vmatprep.subr.bf16.mxu0 %v2474_v25  ;;  %v584_v14 = vsel %vm566_vm0, %v582_v11, %v583_v12 }
  0x46   : > { %2343 = vmatpush3.bf16.msra.mxu1 %v2473_v17  ;;  %v549_v17 = vshrl.u32 %v2506_v9, 16 }
  0x47   : > { %2344 = vmatprep.subr.bf16.mxu1 %v2476_v27  ;;  %889 = vmatmul.mubr.bf16.gmra.mxu0 %v2802_v7 }
  0x48   : > { %2217 = vmatpush3.bf16.msra.mxu0 %v2475_v28  ;;  %1138 = vmatprep.mubr.bf16.mxu0 %v499_v52 }
  0x49   : > { %2218 = vmatprep.subr.bf16.mxu0 %v2477_v30 }
  0x4a   : > { %2345 = vmatpush3.bf16.msra.mxu1 %v2476_v27 }
  0x4b   : > { %2346 = vmatprep.subr.bf16.mxu1 %v2479_v31 }
  0x4c   : > { %2219 = vmatpush3.bf16.msra.mxu0 %v2478_v36 }
  0x4d   : > { %2256 = vmatprep.subr.bf16.mxu0 %v2482_v40 }
  0x4e   : > { %2347 = vmatpush3.bf16.msra.mxu1 %v2479_v31 }
  0x4f   : > { %2356 = vmatprep.subr.bf16.mxu1 %v2484_v47  ;;  %1139 = vmatmul.mubr.bf16.vlgmr.msra.gmra.mxu0 %v2480_v32 }
  0x50   : > { %2257 = vmatpush3.bf16.msra.mxu0 %v2483_v50  ;;  %1146 = vmatprep.mubr.bf16.mxu0 %v2741_v43  ;;  %v2491_v43 = vld [vmem:[%s3128_s3 + $0x1e0] sm:$0xff]  }
  0x51   : > { %2349 = vmatmul.mubr.bf16.vlgmr.msra.gmra.mxu1 %v2722_v34  ;;  %2258 = vmatprep.subr.bf16.mxu0 %v2485_v53  ;;  %v2488_v34 = vld [vmem:[%s3128_s3 + $0x1e8] sm:$0xff]  }
  0x52   : > { %2357 = vmatpush3.bf16.msra.mxu1 %v2484_v47  ;;  %2352 = vmatprep.mubr.bf16.mxu1 %v2745_v44 }
  0x53   : > { %2358 = vmatprep.subr.bf16.mxu1 %v2487_v51 }
  0x54   : > { %2259 = vmatpush3.bf16.msra.mxu0 %v2486_v54 }
  0x55   : > { %2260 = vmatprep.subr.bf16.mxu0 %v2488_v34 }
  0x56   : > { %2359 = vmatpush3.bf16.msra.mxu1 %v2487_v51 }
  0x57   : > { %2360 = vmatprep.subr.bf16.mxu1 %v2490_v55  ;;  %1147 = vmatmul.mubr.bf16.gmra.mxu0 %v2711_v24  ;;  %v2495_v24 = vld [vmem:[%s3128_s3 + $0x198] sm:$0xff]  }
  0x58   : > { %2261 = vmatpush3.bf16.msra.mxu0 %v2489_v57  ;;  %1154 = vmatprep.mubr.bf16.mxu0 %v2774_v56 }
  0x59   : > { %2353 = vmatmul.mubr.bf16.gmra.mxu1 %v2799_v6  ;;  %2262 = vmatprep.subr.bf16.mxu0 %v2491_v43 }
  0x5a   : > { %2361 = vmatpush3.bf16.msra.mxu1 %v2490_v55  ;;  %2372 = vmatprep.mubr.bf16.mxu1 %v2745_v44  ;;  %v2498_v44 = vld [vmem:[%s3128_s3 + $0x190] sm:$0xff]  }
  0x5b   : > { %2362 = vmatprep.subr.bf16.mxu1 %v2493_v58 }
  0x5c   : > { %2263 = vmatpush3.bf16.msra.mxu0 %v2492_v60 }
  0x5d   : > { %2264 = vmatprep.subr.bf16.mxu0 %v2494_v62 }
  0x5e   : > { %2363 = vmatpush3.bf16.msra.mxu1 %v2493_v58 }
  0x5f   : > { %2364 = vmatprep.subr.bf16.mxu1 %v2496_v61  ;;  %1155 = vmatmul.mubr.bf16.gmra.mxu0 %v2725_v35 }
  0x60   : > { %2265 = vmatpush3.bf16.msra.mxu0 %v2495_v24  ;;  %1162 = vmatprep.mubr.bf16.mxu0 %v2818_v15 }
  0x61   : > { %2266 = vmatprep.subr.bf16.mxu0 %v2497_v0 }
  0x62   : > { %2365 = vmatpush3.bf16.msra.mxu1 %v2496_v61 }
  0x63   : > { %2366 = vmatprep.subr.bf16.mxu1 %v2499_v63 }
  0x64   : > { %2267 = vmatpush3.bf16.msra.mxu0 %v2498_v44 }
  0x65   : > { %2268 = vmatprep.subr.bf16.mxu0 %v2500_v2 }
  0x66   : > { %2367 = vmatpush3.bf16.msra.mxu1 %v2499_v63 }
  0x67   : > { %2368 = vmatprep.subr.bf16.mxu1 %v2502_v1  ;;  %1163 = vmatmul.mubr.bf16.gmra.mxu0 %v2784_v59 }
  0x68   : > { %2269 = vmatpush3.bf16.msra.mxu0 %v2501_v3  ;;  %1461 = vmatprep.mubr.bf16.mxu0 %v2774_v56  ;;  %v556_v56 = vshll.u32 %v2507_v10, 16 }
  0x69   : > { %2270 = vmatprep.subr.bf16.mxu0 %v2503_v5 }
  0x6a   : > { %2369 = vmatpush3.bf16.msra.mxu1 %v2502_v1  ;;  %v558_v19 = vrot.slane %v556_v56, 1 }
  0x6b   : > { %2370 = vmatprep.subr.bf16.mxu1 %v2505_v4 }
  0x6c   : > { %2271 = vmatpush3.bf16.msra.mxu0 %v2504_v8 }
  0x6e   : > { %2371 = vmatpush3.bf16.msra.mxu1 %v2505_v4 }
  0x6f   : > { %1462 = vmatmul.mubr.bf16.vlgmr.msra.gmra.mxu0 %v2725_v35 }
  0x70   : > { %1469 = vmatprep.mubr.bf16.mxu0 %v2818_v15 }
  0x71   : > { %2373 = vmatmul.mubr.bf16.vlgmr.msra.gmra.mxu1 %v2799_v6  ;;  %v554_v6 = vor.u32 %v553_v18, %v549_v17 }
  0x72   : > { %2376 = vmatprep.mubr.bf16.mxu1 %v2822_v16 }
  0x73   : > { %v559_v35 = vsel %vm487_vm1, %v554_v6, %v558_v19 }
  0x77   : > { %1470 = vmatmul.mubr.bf16.gmra.mxu0 %v2784_v59 }
  0x78   : > { %1477 = vmatprep.mubr.bf16.mxu0 %v2847_v29 }
  0x79   : > { %2377 = vmatmul.mubr.bf16.gmra.mxu1 %v584_v14 }
  0x7f   : > { %1478 = vmatmul.mubr.bf16.gmra.mxu0 %v2802_v7 }
  0x80   : > { %1485 = vmatprep.mubr.bf16.mxu0 %v559_v35 }
  0x87   : > { %1486 = vmatmul.mubr.bf16.gmra.mxu0 %v2506_v9 }
  0xef   : > { %v2168_v15 = vpop.f32.mrf.mxu0 }
  0xf1   : > { %v2169_v16 = vpop.f32.mrf.mxu0  ;;  %v2326_v25 = vpop.f32.mrf.mxu1 }
  0xf2   : > { %v2170_v20 = vadd.f32 %v2169_v16, %v2168_v15 }
  0xf3   : > { %v2171_v21 = vpop.f32.mrf.mxu0  ;;  %v931_v28 = vpop.f32.mrf.mxu1 }
  0xf4   : > { %v932_v17 = vadd.f32 %v2170_v20, %v931_v28 }
  0xf5   : > { %v2172_v22 = vpop.f32.mrf.mxu0  ;;  %v2967_v30 = vpop.f32.mrf.mxu1 }
  0xf6   : > { %v2173_v8 = vadd.f32 %v2172_v22, %v2171_v21 }
  0xf7   : > { %v2174_v23 = vpop.f32.mrf.mxu0  ;;  %v934_v7 = vpop.f32.mrf.mxu1 }
  0xf8   : > { %v935_v18 = vadd.f32 %v2173_v8, %v934_v7 }
  0xf9   : > { %v2175_v26 = vpop.f32.mrf.mxu0  ;;  %v2973_v37 = vpop.f32.mrf.mxu1 }
  0xfa   : > { %v2176_v27 = vadd.f32 %v2175_v26, %v2174_v23 }
  0xfb   : > { %v2177_v59 = vpop.f32.mrf.mxu0  ;;  %v2979_v40 = vpop.f32.mrf.mxu1 }
  0xfd   : > { %v2178_v29 = vpop.f32.mrf.mxu0  ;;  %v2985_v45 = vpop.f32.mrf.mxu1 }
  0xfe   : > { %v2179_v21 = vadd.f32 %v2178_v29, %v2177_v59 }
  0xff   : > { %v2180_v31 = vpop.f32.mrf.mxu0  ;;  %v2989_v48 = vpop.f32.mrf.mxu1 }
 0x101   : > { %v2181_v32 = vpop.f32.mrf.mxu0 }
 0x102   : > { %v2969_v33 = vadd.f32 %v2181_v32, %v2180_v31  ;;  %v940_v31 = vadd.f32 %v2326_v25, %v2176_v27 }
 0x103   : > { %v2971_v36 = vpop.f32.mrf.mxu0 }
 0x105   : > { %v2975_v38 = vpop.f32.mrf.mxu0 }
 0x107   : > { %v2977_v39 = vpop.f32.mrf.mxu0 }
 0x109   : > { %v2981_v41 = vpop.f32.mrf.mxu0 }
 0x10b   : > { %v2983_v42 = vpop.f32.mrf.mxu0 }
 0x10d   : > { %v2987_v46 = vpop.f32.mrf.mxu0 }
 0x10f   : > { %v2220_v47 = vpop.f32.mrf.mxu0 }
 0x111   : > { %v2221_v49 = vpop.f32.mrf.mxu0  ;;  %v2350_v50 = vpop.f32.mrf.mxu1 }
 0x112   : > { %v2222_v11 = vadd.f32 %v2221_v49, %v2220_v47 }
 0x113   : > { %v2223_v51 = vpop.f32.mrf.mxu0  ;;  %v1205_v53 = vpop.f32.mrf.mxu1 }
 0x114   : > { %v1141_v35 = vadd.f32 %v2222_v11, %v932_v17 }
 0x115   : > { %v2224_v52 = vpop.f32.mrf.mxu0  ;;  %v2991_v34 = vpop.f32.mrf.mxu1 }
 0x116   : > { %v2225_v12 = vadd.f32 %v2224_v52, %v2223_v51 }
 0x117   : > { %v2226_v54 = vpop.f32.mrf.mxu0  ;;  %v1208_v43 = vpop.f32.mrf.mxu1 }
 0x118   : > { %v1144_v16 = vadd.f32 %v2225_v12, %v935_v18 }
 0x119   : > { %v2227_v55 = vpop.f32.mrf.mxu0  ;;  %v2993_v61 = vpop.f32.mrf.mxu1 }
 0x11a   : > { %3132 = vst [vmem:[#allocation2_spill] sm:$0xff] %v2993_v61  ;;  %v2228_v15 = vadd.f32 %v2227_v55, %v2226_v54  ;;  %v1206_v61 = vadd.f32 %v1205_v53, %v1141_v35  ;;  %v1209_v49 = vadd.f32 %v1208_v43, %v1144_v16  ;;  %v943_v54 = vadd.f32 %v2967_v30, %v2179_v21 }
 0x11b   : > { %v2229_v57 = vpop.f32.mrf.mxu0  ;;  %v2995_v63 = vpop.f32.mrf.mxu1 }
 0x11c   : > { %v1149_v47 = vadd.f32 %v2228_v15, %v940_v31 }
 0x11d   : > { %v2230_v58 = vpop.f32.mrf.mxu0  ;;  %v2999_v1 = vpop.f32.mrf.mxu1 }
 0x11e   : > { %3133 = vst [vmem:[#allocation3_spill] sm:$0xff] %v2999_v1  ;;  %v2231_v52 = vadd.f32 %v2230_v58, %v2229_v57  ;;  %v1214_v59 = vadd.f32 %v2350_v50, %v1149_v47  ;;  %v948_v57 = vadd.f32 %v2969_v33, %v2979_v40  ;;  %v2185_v58 = vadd.f32 %v2975_v38, %v2971_v36 }
 0x11f   : > { %v2232_v60 = vpop.f32.mrf.mxu0  ;;  %v3005_v4 = vpop.f32.mrf.mxu1 }
 0x120   : > { %v1152_v43 = vadd.f32 %v2231_v52, %v943_v54 }
 0x121   : > { %v2233_v62 = vpop.f32.mrf.mxu0 }
 0x122   : > { %v2234_v55 = vadd.f32 %v2233_v62, %v2232_v60 }
 0x123   : > { %v2235_v24 = vpop.f32.mrf.mxu0 }
 0x125   : > { %v2236_v0 = vpop.f32.mrf.mxu0 }
 0x126   : > { %v2237_v50 = vadd.f32 %v2236_v0, %v2235_v24  ;;  %v2188_v0 = vadd.f32 %v2981_v41, %v2977_v39 }
 0x127   : > { %v2997_v44 = vpop.f32.mrf.mxu0 }
 0x128   : > { %v956_v21 = vadd.f32 %v2973_v37, %v2188_v0 }
 0x129   : > { %v3001_v2 = vpop.f32.mrf.mxu0 }
 0x12a   : > { %v2240_v16 = vadd.f32 %v3001_v2, %v2997_v44  ;;  %v2191_v44 = vadd.f32 %v2987_v46, %v2983_v42 }
 0x12b   : > { %v3003_v3 = vpop.f32.mrf.mxu0 }
 0x12d   : > { %v3007_v5 = vpop.f32.mrf.mxu0 }
 0x12e   : > { %v2243_v37 = vadd.f32 %v3007_v5, %v3003_v3 }
 0x12f   : > { %v2272_v10 = vpop.f32.mrf.mxu0 }
 0x131   : > { %v2374_v9 = vpop.f32.mrf.mxu1  ;;  %v2273_v14 = vpop.f32.mrf.mxu0 }
 0x132   : > { %v2274_v56 = vadd.f32 %v2273_v14, %v2272_v10  ;;  %v1217_v14 = vadd.f32 %v2991_v34, %v1152_v43 }
 0x133   : > { %v1528_v13 = vpop.f32.mrf.mxu1  ;;  %v2275_v19 = vpop.f32.mrf.mxu0 }
 0x134   : > { %v1529_v32 = vadd.f32 %v2274_v56, %v1528_v13  ;;  %v951_v13 = vadd.f32 %v2185_v58, %v2989_v48 }
 0x135   : > { %v2375_v6 = vpop.f32.mrf.mxu1  ;;  %v2276_v23 = vpop.f32.mrf.mxu0 }
 0x136   : > { %v2277_v1 = vadd.f32 %v2276_v23, %v2275_v19  ;;  %v3009_v28 = vadd.f32 %v1529_v32, %v1206_v61  ;;  %v1160_v23 = vadd.f32 %v2237_v50, %v951_v13 }
 0x137   : > { %v1531_v26 = vpop.f32.mrf.mxu1  ;;  %v2278_v22 = vpop.f32.mrf.mxu0 }
 0x138   : > { %v1532_v51 = vadd.f32 %v2277_v1, %v1531_v26  ;;  %v1157_v1 = vadd.f32 %v2234_v55, %v948_v57  ;;  %v959_v57 = vadd.f32 %v2985_v45, %v2191_v44 }
 0x139   : > { %v2279_v20 = vpop.f32.mrf.mxu0  ;;  %v3014_v27 = vpop.f32.mrf.mxu1 }
 0x13a   : > { %v3011_v7 = vadd.f32 %v1532_v51, %v1209_v49  ;;  %v2280_v8 = vadd.f32 %v2279_v20, %v2278_v22  ;;  %v1222_v48 = vadd.f32 %v2995_v63, %v1157_v1  ;;  %v1165_v20 = vadd.f32 %v2240_v16, %v956_v21 }
 0x13b   : > { %v2281_v25 = vpop.f32.mrf.mxu0  ;;  %v1544_v10 = vpop.f32.mrf.mxu1  ;;  %v1168_v50 = vadd.f32 %v2243_v37, %v959_v57 }
 0x13c   : > { %v1613_v29 = vpack.c.bf16 %v3011_v7, %v3009_v28  ;;  %v1537_v53 = vadd.f32 %v2374_v9, %v2280_v8  ;;  %v1567_v30 = vadd.f32 %v3011_v7, %v3009_v28  ;;  %v1225_v8 = vadd.f32 %v3005_v4, %v1160_v23 }
 0x13d   : > { %v2282_v61 = vpop.f32.mrf.mxu0  ;;  %v2379_v15 = vpop.f32.mrf.mxu1 }
 0x13e   : > { %v1618_v60 = vshrl.u32 %v1613_v29, 16  ;;  %v3024_v62 = vadd.f32 %v1537_v53, %v1214_v59  ;;  %v2283_v33 = vadd.f32 %v2282_v61, %v2281_v25  ;;  %v1621_v38 = vshll.u32 %v1613_v29, 16 }
 0x13f   : > { %v2284_v40 = vpop.f32.mrf.mxu0  ;;  %v1657_v11 = vrot.slane %v1613_v29, 7  ;;  %v1547_v51 = vpop.f32.mrf.mxu1 }
 0x140   : > { %v1620_v36 = vrot.slane %v1618_v60, 7  ;;  %v1568_v12 = vadd.f32 %v1567_v30, %v3024_v62  ;;  %v1540_v17 = vadd.f32 %v2375_v6, %v2283_v33  ;;  %v3136_v30 = vld [vmem:[#allocation2_spill] sm:$0xff] }
 0x141   : > { %v2285_v24 = vpop.f32.mrf.mxu0  ;;  %v1230_v60 = vadd.f32 %v3136_v30, %v1165_v20 }
 0x142   : > { %v1623_v18 = vor.u32 %v1621_v38, %v1620_v36  ;;  %v1672_v56 = vsel %vm3027_vm4, %v1620_v36, %v1657_v11  ;;  %v2286_v19 = vadd.f32 %v2285_v24, %v2284_v40  ;;  %v3046_v6 = vadd.f32 %v1540_v17, %v1217_v14  ;;  %v3137_v14 = vld [vmem:[#allocation3_spill] sm:$0xff] }
 0x143   : > { %v2132_v34 = vcombine.low %v1672_v56, %v1672_v56  ;;  %v2287_v35 = vpop.f32.mrf.mxu0  ;;  %v1233_v17 = vadd.f32 %v3137_v14, %v1168_v50 }
 0x144   : > { %v1668_v39 = vsel %vm3027_vm4, %v1613_v29, %v1623_v18  ;;  %v1545_v41 = vadd.f32 %v2286_v19, %v1544_v10  ;;  %v1614_v63 = vpack.c.bf16 %v3046_v6, %v3024_v62  ;;  %v1569_v47 = vadd.f32 %v1568_v12, %v3046_v6 }
 0x145   : > { %v2130_v26 = vcombine.low %v1668_v39, %v1668_v39  ;;  %v2131_v31 = vcombine.high %v1668_v39, %v1668_v39  ;;  %1722 = vst [vmem:[%s3039_s13 + $0x8] sm:$0x1] %v2132_v34  ;;  %v2288_v32 = vpop.f32.mrf.mxu0 }
 0x146   : > { %v3056_v22 = vadd.f32 %v1545_v41, %v1222_v48  ;;  %v2289_v49 = vadd.f32 %v2288_v32, %v2287_v35  ;;  %v1625_v2 = vshrl.u32 %v1614_v63, 16  ;;  %v1628_v59 = vshll.u32 %v1614_v63, 16 }
 0x147   : > { %1720 = vst [vmem:[%s3039_s13] sm:$0xf] %v2130_v26  ;;  %1721 = vst [vmem:[%s3039_s13 + $0x4] sm:$0xf] %v2131_v31  ;;  %v2290_v52 = vpop.f32.mrf.mxu0  ;;  %v1658_v29 = vrot.slane %v1614_v63, 7 }
 0x148   : > { %v1570_v54 = vadd.f32 %v1569_v47, %v3056_v22  ;;  %v1548_v55 = vadd.f32 %v2289_v49, %v1547_v51  ;;  %v1627_v25 = vrot.slane %v1625_v2, 7 }
 0x149   : > { %v2291_v53 = vpop.f32.mrf.mxu0 }
 0x14a   : > { %v3067_v42 = vadd.f32 %v1548_v55, %v1225_v8  ;;  %v2292_v46 = vadd.f32 %v2291_v53, %v2290_v52  ;;  %v1630_v58 = vor.u32 %v1628_v59, %v1627_v25  ;;  %v1673_v4 = vsel %vm3027_vm4, %v1627_v25, %v1658_v29 }
 0x14b   : > { %v2293_v43 = vpop.f32.mrf.mxu0  ;;  %v2135_v61 = vcombine.low %v1673_v4, %v1673_v4 }
 0x14c   : > { %v1615_v3 = vpack.c.bf16 %v3067_v42, %v3056_v22  ;;  %v1553_v5 = vadd.f32 %v3014_v27, %v2292_v46  ;;  %v1669_v1 = vsel %vm3027_vm4, %v1614_v63, %v1630_v58  ;;  %v1571_v36 = vadd.f32 %v1570_v54, %v3067_v42 }
 0x14d   : > { %v2294_v45 = vpop.f32.mrf.mxu0  ;;  %v2133_v33 = vcombine.low %v1669_v1, %v1669_v1  ;;  %v2134_v40 = vcombine.high %v1669_v1, %v1669_v1  ;;  %1725 = vst [vmem:[%s3039_s13 + $0x14] sm:$0x1] %v2135_v61 }
 0x14e   : > { %v1632_v10 = vshrl.u32 %v1615_v3, 16  ;;  %v1565_v38 = vadd.f32 %v1553_v5, %v1230_v60  ;;  %v2295_v11 = vadd.f32 %v2294_v45, %v2293_v43  ;;  %v1635_v27 = vshll.u32 %v1615_v3, 16 }
 0x14f   : > { %1723 = vst [vmem:[%s3039_s13 + $0xc] sm:$0xf] %v2133_v33  ;;  %1724 = vst [vmem:[%s3039_s13 + $0x10] sm:$0xf] %v2134_v40  ;;  %v1659_v13 = vrot.slane %v1615_v3, 7 }
 0x150   : > { %v1634_v12 = vrot.slane %v1632_v10, 7  ;;  %v1572_v24 = vadd.f32 %v1571_v36, %v1565_v38  ;;  %v1556_v0 = vadd.f32 %v2379_v15, %v2295_v11 }
 0x152   : > { %v1637_v18 = vor.u32 %v1635_v27, %v1634_v12  ;;  %v1674_v56 = vsel %vm3027_vm4, %v1634_v12, %v1659_v13  ;;  %v1566_v48 = vadd.f32 %v1556_v0, %v1233_v17 }
 0x153   : > { %v2138_v19 = vcombine.low %v1674_v56, %v1674_v56 }
 0x154   : > { %v1670_v34 = vsel %vm3027_vm4, %v1615_v3, %v1637_v18  ;;  %v1573_v23 = vadd.f32 %v1572_v24, %v1566_v48  ;;  %v1616_v39 = vpack.c.bf16 %v1566_v48, %v1565_v38 }
 0x155   : > { %v2136_v35 = vcombine.low %v1670_v34, %v1670_v34  ;;  %v2137_v16 = vcombine.high %v1670_v34, %v1670_v34  ;;  %1728 = vst [vmem:[%s3039_s13 + $0x20] sm:$0x1] %v2138_v19 }
 0x156   : > { %v1574_v41 = vrot.slane %v1573_v23, 4  ;;  %v1639_v15 = vshrl.u32 %v1616_v39, 16  ;;  %v1642_v63 = vshll.u32 %v1616_v39, 16  ;;  %v1660_v32 = vrot.slane %v1616_v39, 7 }
 0x157   : > { %1726 = vst [vmem:[%s3039_s13 + $0x18] sm:$0xf] %v2136_v35  ;;  %1727 = vst [vmem:[%s3039_s13 + $0x1c] sm:$0xf] %v2137_v16 }
 0x158   : > { %v1575_v26 = vadd.f32 %v1574_v41, %v1573_v23  ;;  %v1641_v31 = vrot.slane %v1639_v15, 7 }
 0x15a   : > { %v1576_v21 = vrot.slane %v1575_v26, 2  ;;  %v1644_v47 = vor.u32 %v1642_v63, %v1641_v31  ;;  %v1675_v49 = vsel %vm3027_vm4, %v1641_v31, %v1660_v32 }
 0x15b   : > { %v2141_v44 = vcombine.low %v1675_v49, %v1675_v49 }
 0x15c   : > { %v1577_v2 = vadd.f32 %v1576_v21, %v1575_v26  ;;  %v1671_v51 = vsel %vm3027_vm4, %v1616_v39, %v1644_v47 }
 0x15d   : > { %v2139_v52 = vcombine.low %v1671_v51, %v1671_v51  ;;  %v2140_v20 = vcombine.high %v1671_v51, %v1671_v51  ;;  %1731 = vst [vmem:[%s3039_s13 + $0x2c] sm:$0x1] %v2141_v44 }
 0x15e   : > { %v1578_v8 = vrot.slane %v1577_v2, 1 }
 0x15f   : > { %1729 = vst [vmem:[%s3039_s13 + $0x24] sm:$0xf] %v2139_v52  ;;  %1730 = vst [vmem:[%s3039_s13 + $0x28] sm:$0xf] %v2140_v20 }
 0x160   : > { %v1579_v54 = vadd.f32 %v1578_v8, %v1577_v2 }
 0x162   : > { %v1580_v55 = vmul.f32 0.015625, %v1579_v54 }
 0x164   : > { %v1581_v37 = vsub.f32 %v3009_v28, %v1580_v55  ;;  %v1582_v25 = vsub.f32 %v3011_v7, %v1580_v55  ;;  %v1583_v59 = vsub.f32 %v3024_v62, %v1580_v55  ;;  %v1585_v29 = vsub.f32 %v3056_v22, %v1580_v55 }
 0x165   : > { %v1587_v53 = vsub.f32 %v1565_v38, %v1580_v55  ;;  %v1584_v9 = vsub.f32 %v3046_v6, %v1580_v55  ;;  %v1586_v43 = vsub.f32 %v3067_v42, %v1580_v55  ;;  %v1588_v5 = vsub.f32 %v1566_v48, %v1580_v55 }
 0x166   : > { %v1589_v46 = vmul.f32 %v1581_v37, %v1581_v37  ;;  %v1590_v57 = vmul.f32 %v1582_v25, %v1582_v25  ;;  %v1591_v58 = vmul.f32 %v1583_v59, %v1583_v59  ;;  %v1593_v3 = vmul.f32 %v1585_v29, %v1585_v29 }
 0x167   : > { %v1592_v61 = vmul.f32 %v1584_v9, %v1584_v9  ;;  %v1594_v62 = vmul.f32 %v1586_v43, %v1586_v43  ;;  %v1595_v22 = vmul.f32 %v1587_v53, %v1587_v53  ;;  %v1596_v50 = vmul.f32 %v1588_v5, %v1588_v5 }
 0x168   : > { %v1597_v4 = vadd.f32 %v1590_v57, %v1589_v46 }
 0x16a   : > { %v1598_v28 = vadd.f32 %v1597_v4, %v1591_v58 }
 0x16c   : > { %v1599_v7 = vadd.f32 %v1598_v28, %v1592_v61 }
 0x16e   : > { %v1600_v30 = vadd.f32 %v1599_v7, %v1593_v3 }
 0x170   : > { %v1601_v60 = vadd.f32 %v1600_v30, %v1594_v62 }
 0x172   : > { %v1602_v6 = vadd.f32 %v1601_v60, %v1595_v22 }
 0x174   : > { %v1603_v1 = vadd.f32 %v1602_v6, %v1596_v50 }
 0x176   : > { %v1604_v45 = vrot.slane %v1603_v1, 4 }
 0x178   : > { %v1605_v33 = vadd.f32 %v1604_v45, %v1603_v1 }
 0x17a   : > { %v1606_v42 = vrot.slane %v1605_v33, 2 }
 0x17c   : > { %v1607_v40 = vadd.f32 %v1606_v42, %v1605_v33 }
 0x17e   : > { %v1608_v10 = vrot.slane %v1607_v40, 1 }
 0x180   : > { %v1609_v36 = vadd.f32 %v1608_v10, %v1607_v40 }
 0x182   : > { %v1611_v38 = vsel %vm1610_vm2, %v1579_v54, %v1609_v36 }
 0x183   : > { %1612 = vst [vmem:[%s413_s29] sm:$0x3] %v1611_v38 }
 0x184 PF: > { %s16_s22 = sadd.s32 1, %s2546_s22   ;;  %s3138_s18 = smov %s2538_s20 }
 0x185   : > { %p13_p11 = scmp.ge.s32.totalorder %s16_s22, 10   ;;  %s3139_s19 = smov %s2542_s21 }
 0x186   : > { %s3140_s20 = smov %s3143_s23  ;;  %s3141_s21 = smov %s3147_s24 }
 0x187   :  { %15 = sbr.rel (!%p13_p11) target bundleno = 3 (0x3), region = 86 }

</bundles_post_ra>
